<compile_context>
chip_gen: v7x
topology: tpu7x:2x2x1
jax: 0.10.0
libtpu: 0.0.40
codegen_flags: <defaults>
</compile_context>

<pallas_src>
import jax
import jax.numpy as jnp
from jax import lax
from jax.experimental import pallas as pl
from jax.experimental.pallas import tpu as pltpu  # noqa: F401  (kept for TPU params if needed)

# ---------------- small config consistent with the module structure ---------
BATCH = 2
IN_CH = 6                      # conv1 input channels (fixed by the module)
MID_CH = 3                     # conv1 output channels -> mixer stem input
IMG = 32                       # image size (224 in the original)
PATCH = 8                      # patch size (16 in the original)
GRID = IMG // PATCH
SEQ = GRID * GRID              # number of tokens = 16
DIM = 128                      # mixer embedding dim (768 in the original)
DEPTH = 2                      # mixer blocks (12 in the original)
TOK_DIM = 64                   # token-mixing MLP hidden (0.5 * DIM, Mixer-B)
CH_DIM = 256                   # channel-mixing MLP hidden
NUM_CLASSES = 2
EPS = 1e-6                     # timm Mixer LayerNorm eps

HALO = PATCH + 2               # per-patch window incl. 1px conv halo
K_RAW = HALO * HALO * IN_CH    # 600 = folded stem contraction dim
KP = 640                       # K_RAW padded up to a lane multiple

ROWS = BATCH * SEQ             # 32  : batch merged along matmul rows (M)
LANES2 = BATCH * DIM           # 256 : batch stacked along lanes for token mix
OUT_PAD = DIM                  # 128 : lane-dense logits (sliced to 2 outside)

BIAS_ROWS = TOK_DIM + SEQ + 1  # tok_b1 rows + tok_b2 rows + ch_b1 row = 81
BPAD = ((BIAS_ROWS + 7) // 8) * 8          # 88, sublane-aligned per depth
assert CH_DIM == LANES2        # bias pack shares one 256-lane width
assert OUT_PAD == DIM          # misc pack shares the DIM lane width


# ---------------- in-kernel helpers -----------------------------------------
def _gelu_exact(x):
    # exact GELU (matches torch.nn.GELU default)
    return 0.5 * x * (1.0 + lax.erf(x * 0.7071067811865476))


def _layernorm(x, w, b):
    mu = jnp.mean(x, axis=-1, keepdims=True)
    xc = x - mu
    var = jnp.mean(xc * xc, axis=-1, keepdims=True)
    return xc * lax.rsqrt(var + EPS) * w + b


# ---------------- single fused kernel: stem + mixer blocks + head ------------
def mixer_net_kernel(patch_ref, stemw_ref, vecd_ref, tw1_ref, tw2_ref,
                     biasp_ref, cw1_ref, cw2_ref, misc_ref, hw_ref, o_ref):
    # patch_ref : (B*SEQ, KP)        bf16  halo patches, batch stacked on rows
    # stemw_ref : (KP, DIM)          bf16  conv1 folded into patch-embed
    # vecd_ref  : (DEPTH, 5, DIM)    f32   [ln1_w, ln1_b, ln2_w, ln2_b, ch_b2]
    # tw1_ref   : (DEPTH, TOK, SEQ)  bf16  token MLP (pre-transposed)
    # tw2_ref   : (DEPTH, SEQ, TOK)  bf16
    # biasp_ref : (DEPTH*BPAD, 256)  f32   lane-dense [tok_b1 | tok_b2 | ch_b1]
    # cw1_ref   : (DEPTH, DIM, CH)   bf16
    # cw2_ref   : (DEPTH, CH, DIM)   bf16
    # misc_ref  : (4, DIM)           f32   [stem_b, final_ln_w, final_ln_b, head_b]
    # hw_ref    : (DIM, OUT_PAD)     bf16  zero-padded classifier weight
    # o_ref     : (BATCH, OUT_PAD)   f32
    misc = misc_ref[...]                                          # (4, DIM)

    # ---- fused conv1 + patch-embed stem: M = B*SEQ = 32 --------------------
    x = jnp.dot(patch_ref[...], stemw_ref[...],
                preferred_element_type=jnp.float32) + misc[0:1]   # (32, DIM) f32

    for d in range(DEPTH):                     # DEPTH=2 -> unrolled, weights VMEM-resident
        vd = vecd_ref[d]                       # (5, DIM) f32
        base = d * BPAD
        tb1 = biasp_ref[base:base + TOK_DIM, :]                            # (TOK, 256)
        tb2 = biasp_ref[base + TOK_DIM:base + TOK_DIM + SEQ, :]            # (SEQ, 256)
        cb1 = biasp_ref[base + TOK_DIM + SEQ:base + TOK_DIM + SEQ + 1, :]  # (1, 256)

        # ---- token mixing: batch stacked on lanes -> N = B*DIM = 256 -------
        xn = _layernorm(x, vd[0:1], vd[1:2])                      # (32, DIM) f32
        xt = jnp.concatenate([xn[:SEQ], xn[SEQ:]],
                             axis=1).astype(jnp.bfloat16)         # (SEQ, 256)
        h = jnp.dot(tw1_ref[d], xt,
                    preferred_element_type=jnp.float32) + tb1     # (TOK, 256)
        h = _gelu_exact(h).astype(jnp.bfloat16)
        ut = jnp.dot(tw2_ref[d], h,
                     preferred_element_type=jnp.float32) + tb2    # (SEQ, 256)
        x = x + jnp.concatenate([ut[:, :DIM], ut[:, DIM:]], axis=0)   # (32, DIM)

        # ---- channel mixing: batch stacked on rows -> M = 32 ---------------
        xn = _layernorm(x, vd[2:3], vd[3:4])
        h = jnp.dot(xn.astype(jnp.bfloat16), cw1_ref[d],
                    preferred_element_type=jnp.float32) + cb1     # (32, CH)
        h = _gelu_exact(h).astype(jnp.bfloat16)
        x = x + jnp.dot(h, cw2_ref[d],
                        preferred_element_type=jnp.float32) + vd[4:5]

    # ---- final LN + per-batch token mean + lane-dense classifier head ------
    xn = _layernorm(x, misc[1:2], misc[2:3])
    pooled = jnp.mean(xn.reshape(BATCH, SEQ, DIM), axis=1)        # (B, DIM)
    o_ref[...] = (jnp.dot(pooled.astype(jnp.bfloat16), hw_ref[...],
                          preferred_element_type=jnp.float32) + misc[3:4])


def mixer_net(patches, kp):
    # No grid: the whole (tiny) net runs as a single invocation; every operand
    # (≈0.7 MiB total) is whole-array VMEM-resident, so there is no pipeline
    # prologue, no per-step DMA setup, and no double-buffering bookkeeping.
    return pl.pallas_call(
        mixer_net_kernel,
        out_shape=jax.ShapeDtypeStruct((BATCH, OUT_PAD), jnp.float32),
    )(patches, kp["w_fold"], kp["vec_dim"], kp["tok_w1_t"], kp["tok_w2_t"],
      kp["bias_pack"], kp["ch_w1"], kp["ch_w2"], kp["misc"], kp["head_w"])


# ---------------- parameters (deterministic, synthetic) ----------------------
def init_params(key):
    """Raw parameters mirroring the PyTorch module layout."""
    keys = jax.random.split(key, 8 + DEPTH)

    def norm(k, shape, scale=0.02):
        return scale * jax.random.normal(k, shape, jnp.float32)

    params = {
        "conv1_w": norm(keys[0], (3, 3, IN_CH, MID_CH)),          # HWIO
        "stem_w": norm(keys[1], (PATCH * PATCH * MID_CH, DIM)),   # (p,q,c)->DIM
        "stem_b": jnp.zeros((1, DIM), jnp.float32),
        "final_ln_w": jnp.ones((1, DIM), jnp.float32),
        "final_ln_b": jnp.zeros((1, DIM), jnp.float32),
        "head_w": norm(keys[2], (DIM, NUM_CLASSES)),
        "head_b": jnp.zeros((1, NUM_CLASSES), jnp.float32),
        "blocks": [],
    }
    for d in range(DEPTH):
        bk = jax.random.split(keys[8 + d], 4)
        params["blocks"].append({
            "ln1_w": jnp.ones((1, DIM), jnp.float32),
            "ln1_b": jnp.zeros((1, DIM), jnp.float32),
            "tok_w1": norm(bk[0], (SEQ, TOK_DIM)),
            "tok_b1": jnp.zeros((1, TOK_DIM), jnp.float32),
            "tok_w2": norm(bk[1], (TOK_DIM, SEQ)),
            "tok_b2": jnp.zeros((1, SEQ), jnp.float32),
            "ln2_w": jnp.ones((1, DIM), jnp.float32),
            "ln2_b": jnp.zeros((1, DIM), jnp.float32),
            "ch_w1": norm(bk[2], (DIM, CH_DIM)),
            "ch_b1": jnp.zeros((1, CH_DIM), jnp.float32),
            "ch_w2": norm(bk[3], (CH_DIM, DIM)),
            "ch_b2": jnp.zeros((1, DIM), jnp.float32),
        })
    return params


def prepare_params(raw):
    """One-time wrapper-side transform: fold conv1 into the stem weight,
    pre-transpose token-MLP weights, pre-broadcast lane-sparse biases, pack
    the many tiny per-block vectors into a few arrays, cast matmul weights
    to bf16 (biases / LN params stay f32)."""
    # ---- fold conv1 (linear, no bias) into the patch-embed weight ----------
    # tokens[t, e] = sum_{u,v,ci} halo_patch[t, u, v, ci] * w_fold[u, v, ci, e]
    stem_w_r = raw["stem_w"].reshape(PATCH, PATCH, MID_CH, DIM)
    conv_w = raw["conv1_w"]                                   # (3,3,IN_CH,MID)
    w_fold = jnp.zeros((HALO, HALO, IN_CH, DIM), jnp.float32)
    for kh in range(3):
        for kw in range(3):
            contrib = jnp.einsum("ic,pqce->pqie", conv_w[kh, kw], stem_w_r)
            w_fold = w_fold.at[kh:kh + PATCH, kw:kw + PATCH].add(contrib)
    w_fold = w_fold.reshape(K_RAW, DIM)
    w_fold = jnp.pad(w_fold, ((0, KP - K_RAW), (0, 0)))       # zero-pad K

    def stack(name):
        return jnp.stack([blk[name] for blk in raw["blocks"]])   # (DEPTH, ...)

    # ---- pack all per-block (1, DIM) vectors: [ln1_w ln1_b ln2_w ln2_b ch_b2]
    vec_dim = jnp.concatenate(
        [stack("ln1_w"), stack("ln1_b"), stack("ln2_w"), stack("ln2_b"),
         stack("ch_b2")], axis=1)                              # (D, 5, DIM)

    # ---- lane-dense bias pack (width 256 = B*DIM = CH_DIM) ------------------
    #   rows [0:TOK)        tok_b1 pre-broadcast over lanes (was a column bcast)
    #   rows [TOK:TOK+SEQ)  tok_b2 pre-broadcast
    #   row  [TOK+SEQ]      ch_b1
    tok_b1 = jnp.transpose(stack("tok_b1"), (0, 2, 1))         # (D, TOK, 1)
    tok_b2 = jnp.transpose(stack("tok_b2"), (0, 2, 1))         # (D, SEQ, 1)
    per_depth = jnp.concatenate(
        [jnp.broadcast_to(tok_b1, (DEPTH, TOK_DIM, LANES2)),
         jnp.broadcast_to(tok_b2, (DEPTH, SEQ, LANES2)),
         stack("ch_b1")], axis=1)                              # (D, 81, 256)
    per_depth = jnp.pad(per_depth, ((0, 0), (0, BPAD - BIAS_ROWS), (0, 0)))
    bias_pack = per_depth.reshape(DEPTH * BPAD, LANES2)        # (D*88, 256)

    # ---- misc vectors: [stem_b, final_ln_w, final_ln_b, head_b (padded)] ----
    misc = jnp.concatenate(
        [raw["stem_b"], raw["final_ln_w"], raw["final_ln_b"],
         jnp.pad(raw["head_b"], ((0, 0), (0, OUT_PAD - NUM_CLASSES)))],
        axis=0)                                                # (4, DIM)

    head_w = jnp.pad(raw["head_w"], ((0, 0), (0, OUT_PAD - NUM_CLASSES)))

    return {
        "w_fold": w_fold.astype(jnp.bfloat16),                 # (KP, DIM)
        "vec_dim": vec_dim,                                    # (D, 5, DIM) f32
        # token MLP pre-transposed: contract over SEQ, keep lanes dense
        "tok_w1_t": jnp.transpose(stack("tok_w1"), (0, 2, 1)).astype(jnp.bfloat16),  # (D,TOK,SEQ)
        "tok_w2_t": jnp.transpose(stack("tok_w2"), (0, 2, 1)).astype(jnp.bfloat16),  # (D,SEQ,TOK)
        "bias_pack": bias_pack,                                # (D*BPAD, 256) f32
        "ch_w1": stack("ch_w1").astype(jnp.bfloat16),          # (D, DIM, CH)
        "ch_w2": stack("ch_w2").astype(jnp.bfloat16),          # (D, CH, DIM)
        "misc": misc,                                          # (4, DIM) f32
        "head_w": head_w.astype(jnp.bfloat16),                 # (DIM, OUT_PAD)
    }


# ---------------- forward pass -----------------------------------------------
def _extract_halo_patches(x_nhwc):
    # per patch: PATCH x PATCH window + 1px conv halo, flattened (u, v, ci);
    # batch merged onto the row axis; cast to bf16 here (fuses into pad/stack).
    xp = jnp.pad(x_nhwc, ((0, 0), (1, 1), (1, 1), (0, 0)))    # (B, IMG+2, ., 6)
    tiles = [xp[:, gi * PATCH:gi * PATCH + HALO, gj * PATCH:gj * PATCH + HALO, :]
             for gi in range(GRID) for gj in range(GRID)]
    p = jnp.stack(tiles, axis=1).reshape(BATCH * SEQ, K_RAW)
    p = jnp.pad(p, ((0, 0), (0, KP - K_RAW)))                 # (B*SEQ, KP)
    return p.astype(jnp.bfloat16)


@jax.jit
def forward(x_nchw, kparams):
    # NCHW (PyTorch convention) -> NHWC, then halo-patch extraction (tiny XLA
    # prep feeding the single fused Pallas kernel).
    x = jnp.transpose(x_nchw, (0, 2, 3, 1))
    patches = _extract_halo_patches(x)
    logits_padded = mixer_net(patches, kparams)               # (B, OUT_PAD)
    return logits_padded[:, :NUM_CLASSES]                     # (B, NUM_CLASSES)


if __name__ == "__main__":
    key = jax.random.PRNGKey(0)
    pkey, xkey = jax.random.split(key)
    raw_params = init_params(pkey)
    kparams = prepare_params(raw_params)
    x = jax.random.normal(xkey, (BATCH, IN_CH, IMG, IMG), jnp.float32)  # NCHW
    out = forward(x, kparams)
    jax.block_until_ready(out)
    assert out.shape == (BATCH, NUM_CLASSES)
    assert bool(jnp.all(jnp.isfinite(out)))
    print("KERNEL_OK")
</pallas_src>

<mosaic_0001>
module attributes {stable_mosaic.version = 11 : i64} {
  func.func @mixer_net_kernel(%arg0: memref<32x640xbf16, #tpu.memory_space<vmem>>, %arg1: memref<640x128xbf16, #tpu.memory_space<vmem>>, %arg2: memref<2x5x128xf32, #tpu.memory_space<vmem>>, %arg3: memref<2x64x16xbf16, #tpu.memory_space<vmem>>, %arg4: memref<2x16x64xbf16, #tpu.memory_space<vmem>>, %arg5: memref<176x256xf32, #tpu.memory_space<vmem>>, %arg6: memref<2x128x256xbf16, #tpu.memory_space<vmem>>, %arg7: memref<2x256x128xbf16, #tpu.memory_space<vmem>>, %arg8: memref<4x128xf32, #tpu.memory_space<vmem>>, %arg9: memref<128x128xbf16, #tpu.memory_space<vmem>>, %arg10: memref<2x128xf32, #tpu.memory_space<vmem>>) attributes {dimension_semantics = [], scalar_prefetch = 0 : i64, scratch_operands = 0 : i64, tpu.core_type = #tpu.core_type<tc>} {
    %c0 = arith.constant 0 : index
    %c0_0 = arith.constant 0 : index
    %0 = vector.load %arg8[%c0, %c0_0] : memref<4x128xf32, #tpu.memory_space<vmem>>, vector<4x128xf32>
    %c0_1 = arith.constant 0 : index
    %c0_2 = arith.constant 0 : index
    %1 = vector.load %arg0[%c0_1, %c0_2] : memref<32x640xbf16, #tpu.memory_space<vmem>>, vector<32x640xbf16>
    %c0_3 = arith.constant 0 : index
    %c0_4 = arith.constant 0 : index
    %2 = vector.load %arg1[%c0_3, %c0_4] : memref<640x128xbf16, #tpu.memory_space<vmem>>, vector<640x128xbf16>
    %cst = arith.constant dense<0.000000e+00> : vector<32x128xf32>
    %3 = tpu.matmul %1, %2, %cst {dimension_numbers = #tpu.dot_dimension_numbers<[1], [0], [0], [1], [0, 0, 1, 1], [], []>} : vector<32x640xbf16>, vector<640x128xbf16>, vector<32x128xf32> -> vector<32x128xf32>
    %4 = vector.extract_strided_slice %0 {offsets = [0, 0], sizes = [1, 128], strides = [1, 1]} : vector<4x128xf32> to vector<1x128xf32>
    %5 = vector.broadcast %4 : vector<1x128xf32> to vector<32x128xf32>
    %6 = arith.addf %3, %5 : vector<32x128xf32>
    %c0_5 = arith.constant 0 : index
    %c0_6 = arith.constant 0 : index
    %c0_7 = arith.constant 0 : index
    %7 = vector.load %arg2[%c0_5, %c0_6, %c0_7] : memref<2x5x128xf32, #tpu.memory_space<vmem>>, vector<1x5x128xf32>
    %8 = vector.shape_cast %7 : vector<1x5x128xf32> to vector<5x128xf32>
    %c0_8 = arith.constant 0 : index
    %c0_9 = arith.constant 0 : index
    %9 = vector.load %arg5[%c0_8, %c0_9] : memref<176x256xf32, #tpu.memory_space<vmem>>, vector<64x256xf32>
    %c64 = arith.constant 64 : index
    %c0_10 = arith.constant 0 : index
    %10 = vector.load %arg5[%c64, %c0_10] : memref<176x256xf32, #tpu.memory_space<vmem>>, vector<16x256xf32>
    %c80 = arith.constant 80 : index
    %c0_11 = arith.constant 0 : index
    %11 = vector.load %arg5[%c80, %c0_11] : memref<176x256xf32, #tpu.memory_space<vmem>>, vector<1x256xf32>
    %12 = vector.extract_strided_slice %8 {offsets = [0, 0], sizes = [1, 128], strides = [1, 1]} : vector<5x128xf32> to vector<1x128xf32>
    %13 = vector.extract_strided_slice %8 {offsets = [1, 0], sizes = [1, 128], strides = [1, 1]} : vector<5x128xf32> to vector<1x128xf32>
    %cst_12 = arith.constant dense<0.000000e+00> : vector<32xf32>
    %14 = vector.multi_reduction <add>, %6, %cst_12 [1] : vector<32x128xf32> to vector<32xf32>
    %15 = vector.shape_cast %14 : vector<32xf32> to vector<32x1xf32>
    %cst_13 = arith.constant 1.280000e+02 : f32
    %16 = vector.broadcast %cst_13 : f32 to vector<32x1xf32>
    %17 = arith.divf %15, %16 : vector<32x1xf32>
    %18 = vector.broadcast %17 : vector<32x1xf32> to vector<32x128xf32>
    %19 = arith.subf %6, %18 : vector<32x128xf32>
    %20 = arith.mulf %19, %19 : vector<32x128xf32>
    %cst_14 = arith.constant dense<0.000000e+00> : vector<32xf32>
    %21 = vector.multi_reduction <add>, %20, %cst_14 [1] : vector<32x128xf32> to vector<32xf32>
    %22 = vector.shape_cast %21 : vector<32xf32> to vector<32x1xf32>
    %cst_15 = arith.constant 1.280000e+02 : f32
    %23 = vector.broadcast %cst_15 : f32 to vector<32x1xf32>
    %24 = arith.divf %22, %23 : vector<32x1xf32>
    %cst_16 = arith.constant 9.99999997E-7 : f32
    %25 = vector.broadcast %cst_16 : f32 to vector<32x1xf32>
    %26 = arith.addf %24, %25 : vector<32x1xf32>
    %27 = math.rsqrt %26 : vector<32x1xf32>
    %28 = vector.broadcast %27 : vector<32x1xf32> to vector<32x128xf32>
    %29 = arith.mulf %19, %28 : vector<32x128xf32>
    %30 = vector.broadcast %12 : vector<1x128xf32> to vector<32x128xf32>
    %31 = arith.mulf %29, %30 : vector<32x128xf32>
    %32 = vector.broadcast %13 : vector<1x128xf32> to vector<32x128xf32>
    %33 = arith.addf %31, %32 : vector<32x128xf32>
    %34 = vector.extract_strided_slice %33 {offsets = [0, 0], sizes = [16, 128], strides = [1, 1]} : vector<32x128xf32> to vector<16x128xf32>
    %35 = vector.extract_strided_slice %33 {offsets = [16, 0], sizes = [16, 128], strides = [1, 1]} : vector<32x128xf32> to vector<16x128xf32>
    %36 = tpu.concatenate %34, %35 in 1 : vector<16x128xf32>, vector<16x128xf32> -> vector<16x256xf32>
    %37 = arith.truncf %36 : vector<16x256xf32> to vector<16x256xbf16>
    %c0_17 = arith.constant 0 : index
    %c0_18 = arith.constant 0 : index
    %c0_19 = arith.constant 0 : index
    %38 = vector.load %arg3[%c0_17, %c0_18, %c0_19] : memref<2x64x16xbf16, #tpu.memory_space<vmem>>, vector<1x64x16xbf16>
    %39 = vector.shape_cast %38 : vector<1x64x16xbf16> to vector<64x16xbf16>
    %cst_20 = arith.constant dense<0.000000e+00> : vector<64x256xf32>
    %40 = tpu.matmul %39, %37, %cst_20 {dimension_numbers = #tpu.dot_dimension_numbers<[1], [0], [0], [1], [0, 0, 1, 1], [], []>} : vector<64x16xbf16>, vector<16x256xbf16>, vector<64x256xf32> -> vector<64x256xf32>
    %41 = arith.addf %40, %9 : vector<64x256xf32>
    %cst_21 = arith.constant 5.000000e-01 : f32
    %42 = vector.broadcast %cst_21 : f32 to vector<64x256xf32>
    %43 = arith.mulf %42, %41 : vector<64x256xf32>
    %cst_22 = arith.constant 0.707106769 : f32
    %44 = vector.broadcast %cst_22 : f32 to vector<64x256xf32>
    %45 = arith.mulf %41, %44 : vector<64x256xf32>
    %46 = math.erf %45 : vector<64x256xf32>
    %cst_23 = arith.constant 1.000000e+00 : f32
    %47 = vector.broadcast %cst_23 : f32 to vector<64x256xf32>
    %48 = arith.addf %47, %46 : vector<64x256xf32>
    %49 = arith.mulf %43, %48 : vector<64x256xf32>
    %50 = arith.truncf %49 : vector<64x256xf32> to vector<64x256xbf16>
    %c0_24 = arith.constant 0 : index
    %c0_25 = arith.constant 0 : index
    %c0_26 = arith.constant 0 : index
    %51 = vector.load %arg4[%c0_24, %c0_25, %c0_26] : memref<2x16x64xbf16, #tpu.memory_space<vmem>>, vector<1x16x64xbf16>
    %52 = vector.shape_cast %51 : vector<1x16x64xbf16> to vector<16x64xbf16>
    %cst_27 = arith.constant dense<0.000000e+00> : vector<16x256xf32>
    %53 = tpu.matmul %52, %50, %cst_27 {dimension_numbers = #tpu.dot_dimension_numbers<[1], [0], [0], [1], [0, 0, 1, 1], [], []>} : vector<16x64xbf16>, vector<64x256xbf16>, vector<16x256xf32> -> vector<16x256xf32>
    %54 = arith.addf %53, %10 : vector<16x256xf32>
    %55 = vector.extract_strided_slice %54 {offsets = [0, 0], sizes = [16, 128], strides = [1, 1]} : vector<16x256xf32> to vector<16x128xf32>
    %56 = vector.extract_strided_slice %54 {offsets = [0, 128], sizes = [16, 128], strides = [1, 1]} : vector<16x256xf32> to vector<16x128xf32>
    %57 = tpu.concatenate %55, %56 in 0 : vector<16x128xf32>, vector<16x128xf32> -> vector<32x128xf32>
    %58 = arith.addf %6, %57 : vector<32x128xf32>
    %59 = vector.extract_strided_slice %8 {offsets = [2, 0], sizes = [1, 128], strides = [1, 1]} : vector<5x128xf32> to vector<1x128xf32>
    %60 = vector.extract_strided_slice %8 {offsets = [3, 0], sizes = [1, 128], strides = [1, 1]} : vector<5x128xf32> to vector<1x128xf32>
    %cst_28 = arith.constant dense<0.000000e+00> : vector<32xf32>
    %61 = vector.multi_reduction <add>, %58, %cst_28 [1] : vector<32x128xf32> to vector<32xf32>
    %62 = vector.shape_cast %61 : vector<32xf32> to vector<32x1xf32>
    %cst_29 = arith.constant 1.280000e+02 : f32
    %63 = vector.broadcast %cst_29 : f32 to vector<32x1xf32>
    %64 = arith.divf %62, %63 : vector<32x1xf32>
    %65 = vector.broadcast %64 : vector<32x1xf32> to vector<32x128xf32>
    %66 = arith.subf %58, %65 : vector<32x128xf32>
    %67 = arith.mulf %66, %66 : vector<32x128xf32>
    %cst_30 = arith.constant dense<0.000000e+00> : vector<32xf32>
    %68 = vector.multi_reduction <add>, %67, %cst_30 [1] : vector<32x128xf32> to vector<32xf32>
    %69 = vector.shape_cast %68 : vector<32xf32> to vector<32x1xf32>
    %cst_31 = arith.constant 1.280000e+02 : f32
    %70 = vector.broadcast %cst_31 : f32 to vector<32x1xf32>
    %71 = arith.divf %69, %70 : vector<32x1xf32>
    %cst_32 = arith.constant 9.99999997E-7 : f32
    %72 = vector.broadcast %cst_32 : f32 to vector<32x1xf32>
    %73 = arith.addf %71, %72 : vector<32x1xf32>
    %74 = math.rsqrt %73 : vector<32x1xf32>
    %75 = vector.broadcast %74 : vector<32x1xf32> to vector<32x128xf32>
    %76 = arith.mulf %66, %75 : vector<32x128xf32>
    %77 = vector.broadcast %59 : vector<1x128xf32> to vector<32x128xf32>
    %78 = arith.mulf %76, %77 : vector<32x128xf32>
    %79 = vector.broadcast %60 : vector<1x128xf32> to vector<32x128xf32>
    %80 = arith.addf %78, %79 : vector<32x128xf32>
    %81 = arith.truncf %80 : vector<32x128xf32> to vector<32x128xbf16>
    %c0_33 = arith.constant 0 : index
    %c0_34 = arith.constant 0 : index
    %c0_35 = arith.constant 0 : index
    %82 = vector.load %arg6[%c0_33, %c0_34, %c0_35] : memref<2x128x256xbf16, #tpu.memory_space<vmem>>, vector<1x128x256xbf16>
    %83 = vector.shape_cast %82 : vector<1x128x256xbf16> to vector<128x256xbf16>
    %cst_36 = arith.constant dense<0.000000e+00> : vector<32x256xf32>
    %84 = tpu.matmul %81, %83, %cst_36 {dimension_numbers = #tpu.dot_dimension_numbers<[1], [0], [0], [1], [0, 0, 1, 1], [], []>} : vector<32x128xbf16>, vector<128x256xbf16>, vector<32x256xf32> -> vector<32x256xf32>
    %85 = vector.broadcast %11 : vector<1x256xf32> to vector<32x256xf32>
    %86 = arith.addf %84, %85 : vector<32x256xf32>
    %cst_37 = arith.constant 5.000000e-01 : f32
    %87 = vector.broadcast %cst_37 : f32 to vector<32x256xf32>
    %88 = arith.mulf %87, %86 : vector<32x256xf32>
    %cst_38 = arith.constant 0.707106769 : f32
    %89 = vector.broadcast %cst_38 : f32 to vector<32x256xf32>
    %90 = arith.mulf %86, %89 : vector<32x256xf32>
    %91 = math.erf %90 : vector<32x256xf32>
    %cst_39 = arith.constant 1.000000e+00 : f32
    %92 = vector.broadcast %cst_39 : f32 to vector<32x256xf32>
    %93 = arith.addf %92, %91 : vector<32x256xf32>
    %94 = arith.mulf %88, %93 : vector<32x256xf32>
    %95 = arith.truncf %94 : vector<32x256xf32> to vector<32x256xbf16>
    %c0_40 = arith.constant 0 : index
    %c0_41 = arith.constant 0 : index
    %c0_42 = arith.constant 0 : index
    %96 = vector.load %arg7[%c0_40, %c0_41, %c0_42] : memref<2x256x128xbf16, #tpu.memory_space<vmem>>, vector<1x256x128xbf16>
    %97 = vector.shape_cast %96 : vector<1x256x128xbf16> to vector<256x128xbf16>
    %cst_43 = arith.constant dense<0.000000e+00> : vector<32x128xf32>
    %98 = tpu.matmul %95, %97, %cst_43 {dimension_numbers = #tpu.dot_dimension_numbers<[1], [0], [0], [1], [0, 0, 1, 1], [], []>} : vector<32x256xbf16>, vector<256x128xbf16>, vector<32x128xf32> -> vector<32x128xf32>
    %99 = arith.addf %58, %98 : vector<32x128xf32>
    %100 = vector.extract_strided_slice %8 {offsets = [4, 0], sizes = [1, 128], strides = [1, 1]} : vector<5x128xf32> to vector<1x128xf32>
    %101 = vector.broadcast %100 : vector<1x128xf32> to vector<32x128xf32>
    %102 = arith.addf %99, %101 : vector<32x128xf32>
    %c1 = arith.constant 1 : index
    %c0_44 = arith.constant 0 : index
    %c0_45 = arith.constant 0 : index
    %103 = vector.load %arg2[%c1, %c0_44, %c0_45] : memref<2x5x128xf32, #tpu.memory_space<vmem>>, vector<1x5x128xf32>
    %104 = vector.shape_cast %103 : vector<1x5x128xf32> to vector<5x128xf32>
    %c88 = arith.constant 88 : index
    %c0_46 = arith.constant 0 : index
    %105 = vector.load %arg5[%c88, %c0_46] : memref<176x256xf32, #tpu.memory_space<vmem>>, vector<64x256xf32>
    %c152 = arith.constant 152 : index
    %c0_47 = arith.constant 0 : index
    %106 = vector.load %arg5[%c152, %c0_47] : memref<176x256xf32, #tpu.memory_space<vmem>>, vector<16x256xf32>
    %c168 = arith.constant 168 : index
    %c0_48 = arith.constant 0 : index
    %107 = vector.load %arg5[%c168, %c0_48] : memref<176x256xf32, #tpu.memory_space<vmem>>, vector<1x256xf32>
    %108 = vector.extract_strided_slice %104 {offsets = [0, 0], sizes = [1, 128], strides = [1, 1]} : vector<5x128xf32> to vector<1x128xf32>
    %109 = vector.extract_strided_slice %104 {offsets = [1, 0], sizes = [1, 128], strides = [1, 1]} : vector<5x128xf32> to vector<1x128xf32>
    %cst_49 = arith.constant dense<0.000000e+00> : vector<32xf32>
    %110 = vector.multi_reduction <add>, %102, %cst_49 [1] : vector<32x128xf32> to vector<32xf32>
    %111 = vector.shape_cast %110 : vector<32xf32> to vector<32x1xf32>
    %cst_50 = arith.constant 1.280000e+02 : f32
    %112 = vector.broadcast %cst_50 : f32 to vector<32x1xf32>
    %113 = arith.divf %111, %112 : vector<32x1xf32>
    %114 = vector.broadcast %113 : vector<32x1xf32> to vector<32x128xf32>
    %115 = arith.subf %102, %114 : vector<32x128xf32>
    %116 = arith.mulf %115, %115 : vector<32x128xf32>
    %cst_51 = arith.constant dense<0.000000e+00> : vector<32xf32>
    %117 = vector.multi_reduction <add>, %116, %cst_51 [1] : vector<32x128xf32> to vector<32xf32>
    %118 = vector.shape_cast %117 : vector<32xf32> to vector<32x1xf32>
    %cst_52 = arith.constant 1.280000e+02 : f32
    %119 = vector.broadcast %cst_52 : f32 to vector<32x1xf32>
    %120 = arith.divf %118, %119 : vector<32x1xf32>
    %cst_53 = arith.constant 9.99999997E-7 : f32
    %121 = vector.broadcast %cst_53 : f32 to vector<32x1xf32>
    %122 = arith.addf %120, %121 : vector<32x1xf32>
    %123 = math.rsqrt %122 : vector<32x1xf32>
    %124 = vector.broadcast %123 : vector<32x1xf32> to vector<32x128xf32>
    %125 = arith.mulf %115, %124 : vector<32x128xf32>
    %126 = vector.broadcast %108 : vector<1x128xf32> to vector<32x128xf32>
    %127 = arith.mulf %125, %126 : vector<32x128xf32>
    %128 = vector.broadcast %109 : vector<1x128xf32> to vector<32x128xf32>
    %129 = arith.addf %127, %128 : vector<32x128xf32>
    %130 = vector.extract_strided_slice %129 {offsets = [0, 0], sizes = [16, 128], strides = [1, 1]} : vector<32x128xf32> to vector<16x128xf32>
    %131 = vector.extract_strided_slice %129 {offsets = [16, 0], sizes = [16, 128], strides = [1, 1]} : vector<32x128xf32> to vector<16x128xf32>
    %132 = tpu.concatenate %130, %131 in 1 : vector<16x128xf32>, vector<16x128xf32> -> vector<16x256xf32>
    %133 = arith.truncf %132 : vector<16x256xf32> to vector<16x256xbf16>
    %c1_54 = arith.constant 1 : index
    %c0_55 = arith.constant 0 : index
    %c0_56 = arith.constant 0 : index
    %134 = vector.load %arg3[%c1_54, %c0_55, %c0_56] : memref<2x64x16xbf16, #tpu.memory_space<vmem>>, vector<1x64x16xbf16>
    %135 = vector.shape_cast %134 : vector<1x64x16xbf16> to vector<64x16xbf16>
    %cst_57 = arith.constant dense<0.000000e+00> : vector<64x256xf32>
    %136 = tpu.matmul %135, %133, %cst_57 {dimension_numbers = #tpu.dot_dimension_numbers<[1], [0], [0], [1], [0, 0, 1, 1], [], []>} : vector<64x16xbf16>, vector<16x256xbf16>, vector<64x256xf32> -> vector<64x256xf32>
    %137 = arith.addf %136, %105 : vector<64x256xf32>
    %cst_58 = arith.constant 5.000000e-01 : f32
    %138 = vector.broadcast %cst_58 : f32 to vector<64x256xf32>
    %139 = arith.mulf %138, %137 : vector<64x256xf32>
    %cst_59 = arith.constant 0.707106769 : f32
    %140 = vector.broadcast %cst_59 : f32 to vector<64x256xf32>
    %141 = arith.mulf %137, %140 : vector<64x256xf32>
    %142 = math.erf %141 : vector<64x256xf32>
    %cst_60 = arith.constant 1.000000e+00 : f32
    %143 = vector.broadcast %cst_60 : f32 to vector<64x256xf32>
    %144 = arith.addf %143, %142 : vector<64x256xf32>
    %145 = arith.mulf %139, %144 : vector<64x256xf32>
    %146 = arith.truncf %145 : vector<64x256xf32> to vector<64x256xbf16>
    %c1_61 = arith.constant 1 : index
    %c0_62 = arith.constant 0 : index
    %c0_63 = arith.constant 0 : index
    %147 = vector.load %arg4[%c1_61, %c0_62, %c0_63] : memref<2x16x64xbf16, #tpu.memory_space<vmem>>, vector<1x16x64xbf16>
    %148 = vector.shape_cast %147 : vector<1x16x64xbf16> to vector<16x64xbf16>
    %cst_64 = arith.constant dense<0.000000e+00> : vector<16x256xf32>
    %149 = tpu.matmul %148, %146, %cst_64 {dimension_numbers = #tpu.dot_dimension_numbers<[1], [0], [0], [1], [0, 0, 1, 1], [], []>} : vector<16x64xbf16>, vector<64x256xbf16>, vector<16x256xf32> -> vector<16x256xf32>
    %150 = arith.addf %149, %106 : vector<16x256xf32>
    %151 = vector.extract_strided_slice %150 {offsets = [0, 0], sizes = [16, 128], strides = [1, 1]} : vector<16x256xf32> to vector<16x128xf32>
    %152 = vector.extract_strided_slice %150 {offsets = [0, 128], sizes = [16, 128], strides = [1, 1]} : vector<16x256xf32> to vector<16x128xf32>
    %153 = tpu.concatenate %151, %152 in 0 : vector<16x128xf32>, vector<16x128xf32> -> vector<32x128xf32>
    %154 = arith.addf %102, %153 : vector<32x128xf32>
    %155 = vector.extract_strided_slice %104 {offsets = [2, 0], sizes = [1, 128], strides = [1, 1]} : vector<5x128xf32> to vector<1x128xf32>
    %156 = vector.extract_strided_slice %104 {offsets = [3, 0], sizes = [1, 128], strides = [1, 1]} : vector<5x128xf32> to vector<1x128xf32>
    %cst_65 = arith.constant dense<0.000000e+00> : vector<32xf32>
    %157 = vector.multi_reduction <add>, %154, %cst_65 [1] : vector<32x128xf32> to vector<32xf32>
    %158 = vector.shape_cast %157 : vector<32xf32> to vector<32x1xf32>
    %cst_66 = arith.constant 1.280000e+02 : f32
    %159 = vector.broadcast %cst_66 : f32 to vector<32x1xf32>
    %160 = arith.divf %158, %159 : vector<32x1xf32>
    %161 = vector.broadcast %160 : vector<32x1xf32> to vector<32x128xf32>
    %162 = arith.subf %154, %161 : vector<32x128xf32>
    %163 = arith.mulf %162, %162 : vector<32x128xf32>
    %cst_67 = arith.constant dense<0.000000e+00> : vector<32xf32>
    %164 = vector.multi_reduction <add>, %163, %cst_67 [1] : vector<32x128xf32> to vector<32xf32>
    %165 = vector.shape_cast %164 : vector<32xf32> to vector<32x1xf32>
    %cst_68 = arith.constant 1.280000e+02 : f32
    %166 = vector.broadcast %cst_68 : f32 to vector<32x1xf32>
    %167 = arith.divf %165, %166 : vector<32x1xf32>
    %cst_69 = arith.constant 9.99999997E-7 : f32
    %168 = vector.broadcast %cst_69 : f32 to vector<32x1xf32>
    %169 = arith.addf %167, %168 : vector<32x1xf32>
    %170 = math.rsqrt %169 : vector<32x1xf32>
    %171 = vector.broadcast %170 : vector<32x1xf32> to vector<32x128xf32>
    %172 = arith.mulf %162, %171 : vector<32x128xf32>
    %173 = vector.broadcast %155 : vector<1x128xf32> to vector<32x128xf32>
    %174 = arith.mulf %172, %173 : vector<32x128xf32>
    %175 = vector.broadcast %156 : vector<1x128xf32> to vector<32x128xf32>
    %176 = arith.addf %174, %175 : vector<32x128xf32>
    %177 = arith.truncf %176 : vector<32x128xf32> to vector<32x128xbf16>
    %c1_70 = arith.constant 1 : index
    %c0_71 = arith.constant 0 : index
    %c0_72 = arith.constant 0 : index
    %178 = vector.load %arg6[%c1_70, %c0_71, %c0_72] : memref<2x128x256xbf16, #tpu.memory_space<vmem>>, vector<1x128x256xbf16>
    %179 = vector.shape_cast %178 : vector<1x128x256xbf16> to vector<128x256xbf16>
    %cst_73 = arith.constant dense<0.000000e+00> : vector<32x256xf32>
    %180 = tpu.matmul %177, %179, %cst_73 {dimension_numbers = #tpu.dot_dimension_numbers<[1], [0], [0], [1], [0, 0, 1, 1], [], []>} : vector<32x128xbf16>, vector<128x256xbf16>, vector<32x256xf32> -> vector<32x256xf32>
    %181 = vector.broadcast %107 : vector<1x256xf32> to vector<32x256xf32>
    %182 = arith.addf %180, %181 : vector<32x256xf32>
    %cst_74 = arith.constant 5.000000e-01 : f32
    %183 = vector.broadcast %cst_74 : f32 to vector<32x256xf32>
    %184 = arith.mulf %183, %182 : vector<32x256xf32>
    %cst_75 = arith.constant 0.707106769 : f32
    %185 = vector.broadcast %cst_75 : f32 to vector<32x256xf32>
    %186 = arith.mulf %182, %185 : vector<32x256xf32>
    %187 = math.erf %186 : vector<32x256xf32>
    %cst_76 = arith.constant 1.000000e+00 : f32
    %188 = vector.broadcast %cst_76 : f32 to vector<32x256xf32>
    %189 = arith.addf %188, %187 : vector<32x256xf32>
    %190 = arith.mulf %184, %189 : vector<32x256xf32>
    %191 = arith.truncf %190 : vector<32x256xf32> to vector<32x256xbf16>
    %c1_77 = arith.constant 1 : index
    %c0_78 = arith.constant 0 : index
    %c0_79 = arith.constant 0 : index
    %192 = vector.load %arg7[%c1_77, %c0_78, %c0_79] : memref<2x256x128xbf16, #tpu.memory_space<vmem>>, vector<1x256x128xbf16>
    %193 = vector.shape_cast %192 : vector<1x256x128xbf16> to vector<256x128xbf16>
    %cst_80 = arith.constant dense<0.000000e+00> : vector<32x128xf32>
    %194 = tpu.matmul %191, %193, %cst_80 {dimension_numbers = #tpu.dot_dimension_numbers<[1], [0], [0], [1], [0, 0, 1, 1], [], []>} : vector<32x256xbf16>, vector<256x128xbf16>, vector<32x128xf32> -> vector<32x128xf32>
    %195 = arith.addf %154, %194 : vector<32x128xf32>
    %196 = vector.extract_strided_slice %104 {offsets = [4, 0], sizes = [1, 128], strides = [1, 1]} : vector<5x128xf32> to vector<1x128xf32>
    %197 = vector.broadcast %196 : vector<1x128xf32> to vector<32x128xf32>
    %198 = arith.addf %195, %197 : vector<32x128xf32>
    %199 = vector.extract_strided_slice %0 {offsets = [1, 0], sizes = [1, 128], strides = [1, 1]} : vector<4x128xf32> to vector<1x128xf32>
    %200 = vector.extract_strided_slice %0 {offsets = [2, 0], sizes = [1, 128], strides = [1, 1]} : vector<4x128xf32> to vector<1x128xf32>
    %cst_81 = arith.constant dense<0.000000e+00> : vector<32xf32>
    %201 = vector.multi_reduction <add>, %198, %cst_81 [1] : vector<32x128xf32> to vector<32xf32>
    %202 = vector.shape_cast %201 : vector<32xf32> to vector<32x1xf32>
    %cst_82 = arith.constant 1.280000e+02 : f32
    %203 = vector.broadcast %cst_82 : f32 to vector<32x1xf32>
    %204 = arith.divf %202, %203 : vector<32x1xf32>
    %205 = vector.broadcast %204 : vector<32x1xf32> to vector<32x128xf32>
    %206 = arith.subf %198, %205 : vector<32x128xf32>
    %207 = arith.mulf %206, %206 : vector<32x128xf32>
    %cst_83 = arith.constant dense<0.000000e+00> : vector<32xf32>
    %208 = vector.multi_reduction <add>, %207, %cst_83 [1] : vector<32x128xf32> to vector<32xf32>
    %209 = vector.shape_cast %208 : vector<32xf32> to vector<32x1xf32>
    %cst_84 = arith.constant 1.280000e+02 : f32
    %210 = vector.broadcast %cst_84 : f32 to vector<32x1xf32>
    %211 = arith.divf %209, %210 : vector<32x1xf32>
    %cst_85 = arith.constant 9.99999997E-7 : f32
    %212 = vector.broadcast %cst_85 : f32 to vector<32x1xf32>
    %213 = arith.addf %211, %212 : vector<32x1xf32>
    %214 = math.rsqrt %213 : vector<32x1xf32>
    %215 = vector.broadcast %214 : vector<32x1xf32> to vector<32x128xf32>
    %216 = arith.mulf %206, %215 : vector<32x128xf32>
    %217 = vector.broadcast %199 : vector<1x128xf32> to vector<32x128xf32>
    %218 = arith.mulf %216, %217 : vector<32x128xf32>
    %219 = vector.broadcast %200 : vector<1x128xf32> to vector<32x128xf32>
    %220 = arith.addf %218, %219 : vector<32x128xf32>
    %221 = vector.shape_cast %220 : vector<32x128xf32> to vector<2x16x128xf32>
    %cst_86 = arith.constant dense<0.000000e+00> : vector<2x128xf32>
    %222 = vector.multi_reduction <add>, %221, %cst_86 [1] : vector<2x16x128xf32> to vector<2x128xf32>
    %cst_87 = arith.constant 1.600000e+01 : f32
    %223 = vector.broadcast %cst_87 : f32 to vector<2x128xf32>
    %224 = arith.divf %222, %223 : vector<2x128xf32>
    %225 = arith.truncf %224 : vector<2x128xf32> to vector<2x128xbf16>
    %c0_88 = arith.constant 0 : index
    %c0_89 = arith.constant 0 : index
    %226 = vector.load %arg9[%c0_88, %c0_89] : memref<128x128xbf16, #tpu.memory_space<vmem>>, vector<128x128xbf16>
    %cst_90 = arith.constant dense<0.000000e+00> : vector<2x128xf32>
    %227 = tpu.matmul %225, %226, %cst_90 {dimension_numbers = #tpu.dot_dimension_numbers<[1], [0], [0], [1], [0, 0, 1, 1], [], []>} : vector<2x128xbf16>, vector<128x128xbf16>, vector<2x128xf32> -> vector<2x128xf32>
    %228 = vector.extract_strided_slice %0 {offsets = [3, 0], sizes = [1, 128], strides = [1, 1]} : vector<4x128xf32> to vector<1x128xf32>
    %229 = vector.broadcast %228 : vector<1x128xf32> to vector<2x128xf32>
    %230 = arith.addf %227, %229 : vector<2x128xf32>
    %c0_91 = arith.constant 0 : index
    %c0_92 = arith.constant 0 : index
    %231 = vector.load %arg10[%c0_91, %c0_92] : memref<2x128xf32, #tpu.memory_space<vmem>>, vector<2x128xf32>
    tpu.vector_store %arg10[%c0_91, %c0_92], %230 {strides = array<i32>} : memref<2x128xf32, #tpu.memory_space<vmem>>, vector<2x128xf32>,
    return
  }
}

</mosaic_0001>

<bundles_post_ra>
// kernel: forward.1
= control target key start
LH: loop header
LB: loop body
LE: loop exit
PB: predicated region body
PF: predicated region fallthrough
CT: control target
= control target key end

     0   :  { %s3936_s0 = inlined_call_operand.vmem [shape: bf16[32,640], index: 0, kind: input, shape index: {}]   ;;  %s3937_s1 = inlined_call_operand.vmem [shape: bf16[640,128], index: 1, kind: input, shape index: {}]   ;;  %s3938_s2 = inlined_call_operand.vmem [shape: f32[2,5,128], index: 2, kind: input, shape index: {}]   ;;  %s3939_s3 = inlined_call_operand.vmem [shape: bf16[2,64,16], index: 3, kind: input, shape index: {}]   ;;  %s3940_s4 = inlined_call_operand.vmem [shape: bf16[2,16,64], index: 4, kind: input, shape index: {}]   ;;  %s3941_s5 = inlined_call_operand.vmem [shape: f32[176,256], index: 5, kind: input, shape index: {}]   ;;  %s3942_s6 = inlined_call_operand.vmem [shape: bf16[2,128,256], index: 6, kind: input, shape index: {}]   ;;  %s3943_s7 = inlined_call_operand.vmem [shape: bf16[2,256,128], index: 7, kind: input, shape index: {}]   ;;  %s3944_s8 = inlined_call_operand.vmem [shape: f32[4,128], index: 8, kind: input, shape index: {}]   ;;  %s3945_s9 = inlined_call_operand.vmem [shape: bf16[128,128], index: 9, kind: input, shape index: {}]   ;;  %s3946_s10 = inlined_call_operand.hbm [shape: f32[2,128], index: 10, kind: output, shape index: {}]  }
   0x1   :  { %v2765_v0 = vld [vmem:[%s3937_s1 + $0x40] sm:$0xff]   ;;  %v2769_v4 = vld [vmem:[%s3937_s1 + $0x48] sm:$0xff]   ;;  %v2773_v8 = vld [vmem:[%s3937_s1 + $0x50] sm:$0xff]  }
   0x2   :  { %v2766_v1 = vld [vmem:[%s3937_s1] sm:$0xff]   ;;  %2590 = vmatprep.subr.bf16.mxu0 %v2765_v0  ;;  %v2770_v5 = vld [vmem:[%s3937_s1 + $0x8] sm:$0xff]   ;;  %v2774_v9 = vld [vmem:[%s3937_s1 + $0x10] sm:$0xff]  }
   0x3   :  { %v2767_v2 = vld [vmem:[%s3937_s1 + $0xc0] sm:$0xff]   ;;  %2591 = vmatpush3.bf16.msra.mxu0 %v2766_v1  ;;  %v2771_v6 = vld [vmem:[%s3937_s1 + $0xc8] sm:$0xff]   ;;  %v2775_v10 = vld [vmem:[%s3937_s1 + $0xd0] sm:$0xff]  }
   0x4   :  { %v2768_v3 = vld [vmem:[%s3937_s1 + $0x80] sm:$0xff]   ;;  %2618 = vmatprep.subr.bf16.mxu1 %v2767_v2  ;;  %2592 = vmatprep.subr.bf16.mxu0 %v2769_v4  ;;  %v2772_v7 = vld [vmem:[%s3937_s1 + $0x88] sm:$0xff]   ;;  %v2776_v11 = vld [vmem:[%s3937_s1 + $0x90] sm:$0xff]  }
   0x5   :  { %2619 = vmatpush3.bf16.msra.mxu1 %v2768_v3  ;;  %v2777_v12 = vld [vmem:[%s3937_s1 + $0x58] sm:$0xff]   ;;  %v2781_v16 = vld [vmem:[%s3937_s1 + $0x60] sm:$0xff]   ;;  %v2785_v20 = vld [vmem:[%s3937_s1 + $0x68] sm:$0xff]  }
   0x6   :  { %2620 = vmatprep.subr.bf16.mxu1 %v2771_v6  ;;  %v2778_v13 = vld [vmem:[%s3937_s1 + $0x18] sm:$0xff]   ;;  %v2782_v17 = vld [vmem:[%s3937_s1 + $0x20] sm:$0xff]   ;;  %v2786_v21 = vld [vmem:[%s3937_s1 + $0x28] sm:$0xff]  }
   0x7   :  { %2593 = vmatpush3.bf16.msra.mxu0 %v2770_v5  ;;  %v2779_v14 = vld [vmem:[%s3937_s1 + $0xd8] sm:$0xff]   ;;  %v2783_v18 = vld [vmem:[%s3937_s1 + $0xe0] sm:$0xff]   ;;  %v2787_v22 = vld [vmem:[%s3937_s1 + $0xe8] sm:$0xff]  }
   0x8   :  { %2594 = vmatprep.subr.bf16.mxu0 %v2773_v8  ;;  %v2780_v15 = vld [vmem:[%s3937_s1 + $0x98] sm:$0xff]   ;;  %v2784_v19 = vld [vmem:[%s3937_s1 + $0xa0] sm:$0xff]   ;;  %v2788_v23 = vld [vmem:[%s3937_s1 + $0xa8] sm:$0xff]  }
   0x9   :  { %2621 = vmatpush3.bf16.msra.mxu1 %v2772_v7  ;;  %v2789_v24 = vld [vmem:[%s3937_s1 + $0x70] sm:$0xff]   ;;  %v2793_v28 = vld [vmem:[%s3937_s1 + $0x78] sm:$0xff]   ;;  %v2800_v34 = vld [vmem:[%s3937_s1 + $0x100] sm:$0xff]  }
   0xa   :  { %2622 = vmatprep.subr.bf16.mxu1 %v2775_v10  ;;  %v2790_v25 = vld [vmem:[%s3937_s1 + $0x30] sm:$0xff]   ;;  %v2794_v29 = vld [vmem:[%s3937_s1 + $0x38] sm:$0xff]   ;;  %v2803_v36 = vld [vmem:[%s3936_s0 + $0xc] ss:$20 sps:$4 sm:$0xff]  }
   0xb   :  { %2595 = vmatpush3.bf16.msra.mxu0 %v2774_v9  ;;  %v2791_v26 = vld [vmem:[%s3937_s1 + $0xf0] sm:$0xff]   ;;  %v2795_v30 = vld [vmem:[%s3937_s1 + $0xf8] sm:$0xff]   ;;  %v2804_v37 = vld [vmem:[%s3937_s1 + $0x108] sm:$0xff]   ;;  %507 = vmatprep.mubr.bf16.mxu1 %v2803_v36 }
   0xc   :  { %2596 = vmatprep.subr.bf16.mxu0 %v2777_v12  ;;  %v2792_v27 = vld [vmem:[%s3937_s1 + $0xb0] sm:$0xff]   ;;  %v2798_v32 = vld [vmem:[%s3936_s0 + $0x4] ss:$20 sps:$4 sm:$0xff]   ;;  %v2801_v35 = vld [vmem:[%s3936_s0 + $0x8] ss:$20 sps:$4 sm:$0xff]  }
   0xd   :  { %2623 = vmatpush3.bf16.msra.mxu1 %v2776_v11  ;;  %v2796_v31 = vld [vmem:[%s3936_s0] ss:$20 sps:$4 sm:$0xff]   ;;  %v2799_v33 = vld [vmem:[%s3937_s1 + $0xb8] sm:$0xff]   ;;  %458 = vmatprep.mubr.bf16.mxu0 %v2798_v32  ;;  %v2814_v43 = vld [vmem:[%s3936_s0 + $0x30] ss:$20 sps:$4 sm:$0xff]  }
   0xe   :  { %2624 = vmatprep.subr.bf16.mxu1 %v2779_v14  ;;  %v2805_v38 = vld [vmem:[%s3937_s1 + $0x110] sm:$0xff]   ;;  %v2808_v39 = vld [vmem:[%s3936_s0 + $0x2c] ss:$20 sps:$4 sm:$0xff]   ;;  %v2806_v40 = vld [vmem:[%s3937_s1 + $0x118] sm:$0xff]  }
   0xf   :  { %2597 = vmatpush3.bf16.msra.mxu0 %v2778_v13  ;;  %v2811_v41 = vld [vmem:[%s3936_s0 + $0x28] ss:$20 sps:$4 sm:$0xff]   ;;  %v2807_v44 = vld [vmem:[%s3937_s1 + $0x120] sm:$0xff]   ;;  %v2815_v47 = vld [vmem:[%s3937_s1 + $0x130] sm:$0xff]  }
  0x10   :  { %2598 = vmatprep.subr.bf16.mxu0 %v2781_v16  ;;  %v2812_v42 = vld [vmem:[%s3936_s0 + $0x34] ss:$20 sps:$4 sm:$0xff]   ;;  %v2817_v45 = vld [vmem:[%s3936_s0 + $0x10] ss:$20 sps:$4 sm:$0xff]   ;;  %v2816_v48 = vld [vmem:[%s3937_s1 + $0x138] sm:$0xff]  }
  0x11   :  { %2625 = vmatpush3.bf16.msra.mxu1 %v2780_v15  ;;  %v2810_v46 = vld [vmem:[%s3937_s1 + $0x128] sm:$0xff]  }
  0x12   :  { %2626 = vmatprep.subr.bf16.mxu1 %v2783_v18  ;;  %v2818_v49 = vld [vmem:[%s3936_s0 + $0x38] ss:$20 sps:$4 sm:$0xff]  }
  0x13   :  { %2599 = vmatpush3.bf16.msra.mxu0 %v2782_v17 }
  0x14   :  { %2600 = vmatprep.subr.bf16.mxu0 %v2785_v20 }
  0x15   :  { %2627 = vmatpush3.bf16.msra.mxu1 %v2784_v19 }
  0x16   :  { %2628 = vmatprep.subr.bf16.mxu1 %v2787_v22 }
  0x17   :  { %2601 = vmatpush3.bf16.msra.mxu0 %v2786_v21 }
  0x18   :  { %2602 = vmatprep.subr.bf16.mxu0 %v2789_v24 }
  0x19   :  { %2629 = vmatpush3.bf16.msra.mxu1 %v2788_v23 }
  0x1a   :  { %2630 = vmatprep.subr.bf16.mxu1 %v2791_v26 }
  0x1b   :  { %2603 = vmatpush3.bf16.msra.mxu0 %v2790_v25 }
  0x1c   :  { %2604 = vmatprep.subr.bf16.mxu0 %v2793_v28 }
  0x1d   :  { %2631 = vmatpush3.bf16.msra.mxu1 %v2792_v27 }
  0x1e   :  { %2632 = vmatprep.subr.bf16.mxu1 %v2795_v30 }
  0x1f   :  { %2605 = vmatpush3.bf16.msra.mxu0 %v2794_v29 }
  0x20   :  { %2721 = vmatprep.subr.bf16.mxu0 %v2800_v34 }
  0x21   :  { %2633 = vmatpush3.bf16.msra.mxu1 %v2799_v33 }
  0x22   :  { %459 = vmatmul.mubr.bf16.vlgmr.msra.gmra.mrb[0].mxu0 %v2796_v31 }
  0x23   :  { %2722 = vmatpush3.bf16.msra.mxu0 %v2800_v34  ;;  %466 = vmatprep.mubr.bf16.mxu0 %v2808_v39 }
  0x24   :  { %508 = vmatmul.mubr.bf16.vlgmr.msra.gmra.mrb[0].mxu1 %v2801_v35  ;;  %2723 = vmatprep.subr.bf16.mxu0 %v2804_v37 }
  0x25   :  { %515 = vmatprep.mubr.bf16.mxu1 %v2812_v42 }
  0x27   :  { %2724 = vmatpush3.bf16.msra.mxu0 %v2804_v37 }
  0x28   :  { %2725 = vmatprep.subr.bf16.mxu0 %v2805_v38 }
  0x2a   :  { %467 = vmatmul.mubr.bf16.gmra.mrb[4].mxu0 %v2811_v41 }
  0x2b   :  { %2726 = vmatpush3.bf16.msra.mxu0 %v2805_v38  ;;  %2737 = vmatprep.mubr.bf16.mxu0 %v2817_v45 }
  0x2c   :  { %2727 = vmatprep.subr.bf16.mxu0 %v2806_v40  ;;  %516 = vmatmul.mubr.bf16.gmra.mrb[4].mxu1 %v2814_v43 }
  0x2f   :  { %2728 = vmatpush3.bf16.msra.mxu0 %v2806_v40 }
  0x30   :  { %2729 = vmatprep.subr.bf16.mxu0 %v2807_v44 }
  0x33   :  { %2730 = vmatpush3.bf16.msra.mxu0 %v2807_v44 }
  0x34   :  { %2731 = vmatprep.subr.bf16.mxu0 %v2810_v46 }
  0x37   :  { %2732 = vmatpush3.bf16.msra.mxu0 %v2810_v46 }
  0x38   :  { %2733 = vmatprep.subr.bf16.mxu0 %v2815_v47 }
  0x3b   :  { %2734 = vmatpush3.bf16.msra.mxu0 %v2815_v47 }
  0x3c   :  { %2735 = vmatprep.subr.bf16.mxu0 %v2816_v48 }
  0x3f   :  { %2736 = vmatpush3.bf16.msra.mxu0 %v2816_v48 }
  0x42   :  { %2738 = vmatmul.mubr.bf16.vlgmr.msra.gmra.mrb[8].mxu0 %v2818_v49 }
  0x43   :  { %15 = vsyncpa [#allocation3], 0  ;;  %v130_v50 = vlaneseq  ;;  %v37_v53 = vld [vmem:[%s3944_s8] sm:$0xf]  ;;  %v3078_v47 = vmov 0   ;;  %vm687_vm0 = vcmask 130048  }
  0x44   :  { %732 = vmatprep.mubr.bf16.mxu1 %v3078_v47  ;;  %904 = vmatprep.mubr.bf16.mxu0 %v3078_v47  ;;  %vm868_vm1 = vcmask 523264   ;;  %vm3080_vm2 = vmmov 0   ;;  %vm2280_vm3 = vcmask 1041409  }
  0x45   :  { %v3287_v51 = vshrl.u32 %v130_v50, 7 }
  0x47   :  { %v3290_v52 = vsub.s32 0, %v3287_v51 }
  0x49   :  { %v133_v55 = vrot.slane %v37_v53, %v3290_v52 }
  0xf5   :  { %v2606_v54 = vpop.f32.mrb[0].mxu0 }
  0xf6   :  { %v2607_v56 = vpop.f32.mrb[1].mxu0 }
  0xf7   :  { %v2608_v57 = vadd.f32 %v2607_v56, %v2606_v54  ;;  %v2609_v58 = vpop.f32.mrb[2].mxu0  ;;  %v2634_v59 = vpop.f32.mrb[0].mxu1 }
  0xf8   :  { %v2610_v60 = vpop.f32.mrb[3].mxu0  ;;  %v2635_v63 = vpop.f32.mrb[1].mxu1 }
  0xf9   :  { %v461_v61 = vadd.f32 %v2608_v57, %v133_v55  ;;  %v2611_v62 = vadd.f32 %v2610_v60, %v2609_v58  ;;  %v2636_v0 = vadd.f32 %v2635_v63, %v2634_v59  ;;  %v2637_v1 = vpop.f32.mrb[2].mxu1 }
  0xfa   :  { %v2638_v3 = vpop.f32.mrb[3].mxu1 }
  0xfb   :  { %v464_v2 = vadd.f32 %v2611_v62, %v133_v55  ;;  %v2639_v4 = vadd.f32 %v2638_v3, %v2637_v1  ;;  %v510_v5 = vadd.f32 %v2636_v0, %v461_v61  ;;  %v3317_v62 = vld [vmem:[%s3938_s2] sm:$0x1f]  ;;  %v3320_v0 = vsub.s32 1, %v3287_v51 }
  0xfd   :  { %v2612_v6 = vpop.f32.mrb[4].mxu0  ;;  %v513_v8 = vadd.f32 %v2639_v4, %v464_v2  ;;  %v644_v2 = vrot.slane %v3317_v62, %v3290_v52 }
  0xfe   :  { %v2613_v7 = vpop.f32.mrb[5].mxu0 }
  0xff   :  { %v2614_v9 = vadd.f32 %v2613_v7, %v2612_v6  ;;  %v2615_v10 = vpop.f32.mrb[6].mxu0  ;;  %v2640_v11 = vpop.f32.mrb[4].mxu1 }
 0x100   :  { %v2616_v12 = vpop.f32.mrb[7].mxu0  ;;  %v2641_v15 = vpop.f32.mrb[5].mxu1 }
 0x101   :  { %v469_v13 = vadd.f32 %v2614_v9, %v133_v55  ;;  %v2617_v14 = vadd.f32 %v2616_v12, %v2615_v10  ;;  %v2642_v16 = vadd.f32 %v2641_v15, %v2640_v11  ;;  %v2643_v17 = vpop.f32.mrb[6].mxu1 }
 0x102   :  { %v2644_v19 = vpop.f32.mrb[7].mxu1 }
 0x103   :  { %v472_v18 = vadd.f32 %v2617_v14, %v133_v55  ;;  %v2645_v20 = vadd.f32 %v2644_v19, %v2643_v17  ;;  %v518_v21 = vadd.f32 %v2642_v16, %v469_v13 }
 0x105   :  { %v521_v22 = vadd.f32 %v2645_v20, %v472_v18  ;;  %v2819_v20 = vld [vmem:[%s3939_s3] sm:$0xff]  }
 0x115   :  { %v2739_v23 = vpop.f32.mrb[8].mxu0 }
 0x116   :  { %v3296_v24 = vadd.f32 %v2739_v23, %v518_v21  ;;  %v558_v25 = vpop.f32.mrb[9].mxu0  ;;  %v2820_v21 = vld [vmem:[%s3939_s3 + $0x8] sm:$0xff]   ;;  %v2822_v23 = vld [vmem:[%s3939_s3 + $0x18] sm:$0xff]  }
 0x117   :  { %v3298_v26 = vadd.f32 %v558_v25, %v510_v5  ;;  %v2740_v27 = vpop.f32.mrb[10].mxu0  ;;  %v574_v25 = vld [vmem:[%s3941_s5] sm:$0xff] }
 0x118   :  { %v3300_v28 = vadd.f32 %v2740_v27, %v521_v22  ;;  %v561_v29 = vpop.f32.mrb[11].mxu0  ;;  %600 = vadd.xlane.f32.xlu0 %v3296_v24  ;;  %v2821_v22 = vld [vmem:[%s3939_s3 + $0x10] sm:$0xff]   ;;  %v575_v27 = vld [vmem:[%s3941_s5 + $0x8] sm:$0xff] }
 0x119   :  { %v3303_v30 = vadd.f32 %v561_v29, %v513_v8  ;;  %596 = vadd.xlane.f32.xlu1 %v3298_v26  ;;  %v652_v8 = vrot.slane %v3317_v62, %v3320_v0 }
 0x11c   :  { %602 = vadd.xlane.f32.xlu0 %v3300_v28 }
 0x11d   :  { %598 = vadd.xlane.f32.xlu1 %v3303_v30 }
 0x1a5   :  { %v601_v31 = vpop.xlane.xlu0 %600 }
 0x1a6   :  { %v607_v32 = vmul.f32 0.0078125, %v601_v31  ;;  %v597_v33 = vpop.xlane.xlu1 %596  ;;  %v576_v31 = vld [vmem:[%s3941_s5 + $0x10] sm:$0xff] }
 0x1a7   :  { %v605_v34 = vmul.f32 0.0078125, %v597_v33 }
 0x1a8   :  { %v611_v35 = vsub.f32 %v3296_v24, %v607_v32 }
 0x1a9   :  { %v603_v36 = vpop.xlane.xlu0 %602  ;;  %v609_v37 = vsub.f32 %v3298_v26, %v605_v34  ;;  %v577_v34 = vld [vmem:[%s3941_s5 + $0x18] sm:$0xff] }
 0x1aa   :  { %v608_v38 = vmul.f32 0.0078125, %v603_v36  ;;  %v599_v39 = vpop.xlane.xlu1 %598  ;;  %v615_v40 = vmul.f32 %v611_v35, %v611_v35 }
 0x1ab   :  { %v606_v41 = vmul.f32 0.0078125, %v599_v39  ;;  %v613_v45 = vmul.f32 %v609_v37, %v609_v37 }
 0x1ac   :  { %v612_v42 = vsub.f32 %v3300_v28, %v608_v38  ;;  %621 = vadd.xlane.f32.xlu0 %v615_v40 }
 0x1ad   :  { %v610_v43 = vsub.f32 %v3303_v30, %v606_v41 }
 0x1ae   :  { %v616_v44 = vmul.f32 %v612_v42, %v612_v42 }
 0x1af   :  { %v614_v46 = vmul.f32 %v610_v43, %v610_v43 }
 0x1b0   :  { %623 = vadd.xlane.f32.xlu1 %v616_v44  ;;  %617 = vadd.xlane.f32.xlu0 %v613_v45  ;;  %v578_v44 = vld [vmem:[%s3941_s5 + $0x20] sm:$0xff]  ;;  %v579_v45 = vld [vmem:[%s3941_s5 + $0x28] sm:$0xff] }
 0x1b4   :  { %619 = vadd.xlane.f32.xlu1 %v614_v46 }
 0x239   :  { %v622_v48 = vpop.xlane.xlu0 %621 }
 0x23a   :  { %v627_v49 = vmul.f32 0.0078125, %v622_v48  ;;  %v580_v48 = vld [vmem:[%s3941_s5 + $0x30] sm:$0xff] }
 0x23c   :  { %v631_v50 = vadd.f32 1e-06, %v627_v49 }
 0x23d   :  { %v618_v53 = vpop.xlane.xlu0 %617  ;;  %v624_v54 = vpop.xlane.xlu1 %623 }
 0x23e   :  { %2917 = vrsqrt.f32 %v631_v50  ;;  %v625_v55 = vmul.f32 0.0078125, %v618_v53  ;;  %v628_v56 = vmul.f32 0.0078125, %v624_v54  ;;  %v581_v53 = vld [vmem:[%s3941_s5 + $0x38] sm:$0xff] }
 0x240   :  { %v629_v57 = vadd.f32 1e-06, %v625_v55  ;;  %v632_v58 = vadd.f32 1e-06, %v628_v56 }
 0x241   :  { %v620_v59 = vpop.xlane.xlu1 %619 }
 0x242   :  { %2919 = vrsqrt.f32 %v629_v57  ;;  %v626_v60 = vmul.f32 0.0078125, %v620_v59 }
 0x243   :  { %2921 = vrsqrt.f32 %v632_v58 }
 0x244   :  { %v630_v61 = vadd.f32 1e-06, %v626_v60 }
 0x246   :  { %2923 = vrsqrt.f32 %v630_v61 }
 0x248   :  { %v2918_v63 = vpop.eup %2917 }
 0x249   :  { %v639_v1 = vmul.f32 %v2918_v63, %v611_v35 }
 0x24b   :  { %v647_v7 = vmul.f32 %v644_v2, %v639_v1  ;;  %v582_v1 = vld [vmem:[%s3941_s5 + $0x40] sm:$0xff] }
 0x24c   :  { %v2920_v3 = vpop.eup %2919 }
 0x24d   :  { %v2922_v4 = vpop.eup %2921  ;;  %v637_v5 = vmul.f32 %v2920_v3, %v609_v37  ;;  %v655_v13 = vadd.f32 %v652_v8, %v647_v7  ;;  %v583_v3 = vld [vmem:[%s3941_s5 + $0x48] sm:$0xff] }
 0x24e   :  { %v640_v6 = vmul.f32 %v2922_v4, %v612_v42 }
 0x24f   :  { %v645_v12 = vmul.f32 %v644_v2, %v637_v5 }
 0x250   :  { %v2924_v9 = vpop.eup %2923  ;;  %v648_v10 = vmul.f32 %v644_v2, %v640_v6 }
 0x251   :  { %v638_v11 = vmul.f32 %v2924_v9, %v610_v43  ;;  %v653_v17 = vadd.f32 %v652_v8, %v645_v12 }
 0x252   :  { %v656_v14 = vadd.f32 %v652_v8, %v648_v10 }
 0x253   :  { %v646_v15 = vmul.f32 %v644_v2, %v638_v11  ;;  %v584_v11 = vld [vmem:[%s3941_s5 + $0x50] sm:$0xff] }
 0x254   :  { %v658_v16 = vpack.c.bf16 %v656_v14, %v655_v13 }
 0x255   :  { %v654_v18 = vadd.f32 %v652_v8, %v646_v15 }
 0x256   :  { %700 = vmatprep.subr.bf16.mxu1 %v658_v16 }
 0x257   :  { %v657_v19 = vpack.c.bf16 %v654_v18, %v653_v17  ;;  %v585_v18 = vld [vmem:[%s3941_s5 + $0x58] sm:$0xff] }
 0x259   :  { %701 = vmatpush1.bf16.msra.mxu1 %v657_v19 }
 0x25c   :  { %2442 = vmatmul.mubr.msk.bf16.vlgmr.msra.gmra.mrb[8].mxu1 %vm687_vm0, %v2819_v20 }
 0x25d   :  { %742 = vmatprep.mubr.bf16.mxu1 %v3078_v47 }
 0x264   :  { %2443 = vmatmul.mubr.msk.bf16.gmra.mrb[12].mxu1 %vm687_vm0, %v2820_v21 }
 0x265   :  { %752 = vmatprep.mubr.bf16.mxu1 %v3078_v47 }
 0x26c   :  { %2444 = vmatmul.mubr.msk.bf16.gmra.mrb[16].mxu1 %vm687_vm0, %v2821_v22 }
 0x26d   :  { %762 = vmatprep.mubr.bf16.mxu1 %v3078_v47 }
 0x274   :  { %2445 = vmatmul.mubr.msk.bf16.gmra.mrb[20].mxu1 %vm687_vm0, %v2822_v23 }
 0x275   :  { %1120 = vmatprep.mubr.bf16.mxu1 %v3078_v47 }
 0x32f   :  { %v734_v29 = vpop.f32.mrb[8].mxu1 }
 0x330   :  { %v735_v32 = vadd.f32 %v734_v29, %v574_v25  ;;  %v736_v33 = vpop.f32.mrb[9].mxu1 }
 0x331   :  { %v737_v35 = vadd.f32 %v736_v33, %v575_v27  ;;  %v738_v36 = vpop.f32.mrb[10].mxu1 }
 0x332   :  { %v789_v37 = vmul.f32 0.70710677, %v735_v32  ;;  %v739_v38 = vadd.f32 %v738_v36, %v576_v31  ;;  %v740_v39 = vpop.f32.mrb[11].mxu1  ;;  %v773_v13 = vmul.f32 0.5, %v735_v32 }
 0x333   :  { %v790_v40 = vmul.f32 0.70710677, %v737_v35  ;;  %v741_v41 = vadd.f32 %v740_v39, %v577_v34  ;;  %v774_v19 = vmul.f32 0.5, %v737_v35  ;;  %v586_v35 = vld [vmem:[%s3941_s5 + $0x60] sm:$0xff] }
 0x334   :  { %2925 = verf.f32 %v789_v37  ;;  %v791_v42 = vmul.f32 0.70710677, %v739_v38  ;;  %v775_v14 = vmul.f32 0.5, %v739_v38 }
 0x335   :  { %2927 = verf.f32 %v790_v40  ;;  %v792_v43 = vmul.f32 0.70710677, %v741_v41  ;;  %v776_v20 = vmul.f32 0.5, %v741_v41  ;;  %v587_v40 = vld [vmem:[%s3941_s5 + $0x68] sm:$0xff] }
 0x336   :  { %2929 = verf.f32 %v791_v42 }
 0x337   :  { %2931 = verf.f32 %v792_v43  ;;  %v744_v46 = vpop.f32.mrb[12].mxu1 }
 0x338   :  { %v3367_v49 = vadd.f32 %v744_v46, %v578_v44  ;;  %v746_v50 = vpop.f32.mrb[13].mxu1 }
 0x339   :  { %v3372_v54 = vadd.f32 %v746_v50, %v579_v45  ;;  %v748_v55 = vpop.f32.mrb[14].mxu1 }
 0x33a   :  { %v793_v56 = vmul.f32 0.70710677, %v3367_v49  ;;  %v749_v57 = vadd.f32 %v748_v55, %v580_v48  ;;  %v750_v58 = vpop.f32.mrb[15].mxu1 }
 0x33b   :  { %v794_v59 = vmul.f32 0.70710677, %v3372_v54  ;;  %v3376_v60 = vadd.f32 %v750_v58, %v581_v53  ;;  %v588_v53 = vld [vmem:[%s3941_s5 + $0x70] sm:$0xff] }
 0x33c   :  { %2933 = verf.f32 %v793_v56  ;;  %v795_v61 = vmul.f32 0.70710677, %v749_v57  ;;  %v777_v56 = vmul.f32 0.5, %v3367_v49  ;;  %v779_v58 = vmul.f32 0.5, %v749_v57 }
 0x33d   :  { %2935 = verf.f32 %v794_v59  ;;  %v796_v63 = vmul.f32 0.70710677, %v3376_v60 }
 0x33e   :  { %v2926_v2 = vpop.eup %2925  ;;  %2937 = verf.f32 %v795_v61 }
 0x33f   :  { %v2928_v4 = vpop.eup %2927  ;;  %v821_v5 = vadd.f32 1.0, %v2926_v2  ;;  %2939 = verf.f32 %v796_v63  ;;  %v754_v6 = vpop.f32.mrb[16].mxu1  ;;  %v778_v2 = vmul.f32 0.5, %v3372_v54 }
 0x340   :  { %v2930_v7 = vpop.eup %2929  ;;  %v822_v8 = vadd.f32 1.0, %v2928_v4  ;;  %v3385_v9 = vadd.f32 %v754_v6, %v582_v1  ;;  %v756_v10 = vpop.f32.mrb[17].mxu1  ;;  %v589_v1 = vld [vmem:[%s3941_s5 + $0x78] sm:$0xff] }
 0x341   :  { %v2932_v12 = vpop.eup %2931  ;;  %v823_v15 = vadd.f32 1.0, %v2930_v7  ;;  %v3390_v16 = vadd.f32 %v756_v10, %v583_v3  ;;  %v758_v17 = vpop.f32.mrb[18].mxu1  ;;  %v837_v25 = vmul.f32 %v821_v5, %v773_v13  ;;  %v780_v3 = vmul.f32 0.5, %v3376_v60 }
 0x342   :  { %v824_v21 = vadd.f32 1.0, %v2932_v12  ;;  %v797_v22 = vmul.f32 0.70710677, %v3385_v9  ;;  %v760_v23 = vpop.f32.mrb[19].mxu1  ;;  %v759_v31 = vadd.f32 %v758_v17, %v584_v11  ;;  %v838_v32 = vmul.f32 %v822_v8, %v774_v19 }
 0x343   :  { %v839_v27 = vmul.f32 %v823_v15, %v775_v14  ;;  %v798_v29 = vmul.f32 0.70710677, %v3390_v16  ;;  %v761_v34 = vadd.f32 %v760_v23, %v585_v18 }
 0x344   :  { %v840_v33 = vmul.f32 %v824_v21, %v776_v20  ;;  %2941 = verf.f32 %v797_v22  ;;  %v799_v37 = vmul.f32 0.70710677, %v759_v31  ;;  %v781_v22 = vmul.f32 0.5, %v3385_v9 }
 0x345   :  { %v853_v36 = vpack.c.bf16 %v839_v27, %v837_v25  ;;  %2943 = verf.f32 %v798_v29  ;;  %v800_v39 = vmul.f32 0.70710677, %v761_v34  ;;  %v783_v23 = vmul.f32 0.5, %v759_v31 }
 0x346   :  { %v2934_v38 = vpop.eup %2933  ;;  %v854_v41 = vpack.c.bf16 %v840_v33, %v838_v32  ;;  %2945 = verf.f32 %v799_v37  ;;  %v782_v27 = vmul.f32 0.5, %v3390_v16  ;;  %v784_v29 = vmul.f32 0.5, %v761_v34 }
 0x347   :  { %v2936_v42 = vpop.eup %2935  ;;  %v825_v43 = vadd.f32 1.0, %v2934_v38  ;;  %v764_v44 = vpop.f32.mrb[20].mxu1  ;;  %2947 = verf.f32 %v800_v39 }
 0x348   :  { %v2938_v45 = vpop.eup %2937  ;;  %v826_v46 = vadd.f32 1.0, %v2936_v42  ;;  %v765_v48 = vadd.f32 %v764_v44, %v586_v35  ;;  %v766_v50 = vpop.f32.mrb[21].mxu1  ;;  %872 = vmatprep.subr.bf16.mxu0 %v854_v41 }
 0x349   :  { %v2940_v55 = vpop.eup %2939  ;;  %v827_v59 = vadd.f32 1.0, %v2938_v45  ;;  %v767_v61 = vadd.f32 %v766_v50, %v587_v40  ;;  %v768_v63 = vpop.f32.mrb[22].mxu1  ;;  %873 = vmatpush1.bf16.msra.mxu0 %v853_v36  ;;  %v841_v7 = vmul.f32 %v825_v43, %v777_v56 }
 0x34a   :  { %v828_v4 = vadd.f32 1.0, %v2940_v55  ;;  %v801_v5 = vmul.f32 0.70710677, %v765_v48  ;;  %v770_v6 = vpop.f32.mrb[23].mxu1  ;;  %v769_v49 = vadd.f32 %v768_v63, %v588_v53  ;;  %v842_v57 = vmul.f32 %v826_v46, %v778_v2  ;;  %v591_v2 = vld [vmem:[%s3941_s5 + $0x88] sm:$0xff] }
 0x34b   :  { %v843_v8 = vmul.f32 %v827_v59, %v779_v58  ;;  %v802_v10 = vmul.f32 0.70710677, %v767_v61  ;;  %v771_v12 = vadd.f32 %v770_v6, %v589_v1  ;;  %v785_v9 = vmul.f32 0.5, %v765_v48  ;;  %v2823_v1 = vld [vmem:[%s3940_s4] sm:$0xff]  }
 0x34c   :  { %v844_v11 = vmul.f32 %v828_v4, %v780_v3  ;;  %2949 = verf.f32 %v801_v5  ;;  %v803_v14 = vmul.f32 0.70710677, %v769_v49  ;;  %v787_v31 = vmul.f32 0.5, %v769_v49  ;;  %v590_v48 = vld [vmem:[%s3941_s5 + $0x80] sm:$0xff]  ;;  %v592_v3 = vld [vmem:[%s3941_s5 + $0x90] sm:$0xff] }
 0x34d   :  { %v855_v13 = vpack.c.bf16 %v843_v8, %v841_v7  ;;  %2951 = verf.f32 %v802_v10  ;;  %v804_v17 = vmul.f32 0.70710677, %v771_v12  ;;  %v786_v16 = vmul.f32 0.5, %v767_v61  ;;  %v593_v7 = vld [vmem:[%s3941_s5 + $0x98] sm:$0xff] }
 0x34e   :  { %v2942_v15 = vpop.eup %2941  ;;  %v856_v18 = vpack.c.bf16 %v844_v11, %v842_v57  ;;  %2953 = verf.f32 %v803_v14  ;;  %v788_v34 = vmul.f32 0.5, %v771_v12 }
 0x34f   :  { %v2944_v54 = vpop.eup %2943  ;;  %v829_v60 = vadd.f32 1.0, %v2942_v15  ;;  %2955 = verf.f32 %v804_v17 }
 0x350   :  { %874 = vmatprep.subr.bf16.mxu0 %v856_v18  ;;  %v2946_v19 = vpop.eup %2945  ;;  %v830_v20 = vadd.f32 1.0, %v2944_v54 }
 0x351   :  { %875 = vmatpush1.bf16.msra.mxu0 %v855_v13  ;;  %v2948_v21 = vpop.eup %2947  ;;  %v831_v25 = vadd.f32 1.0, %v2946_v19  ;;  %v845_v33 = vmul.f32 %v829_v60, %v781_v22 }
 0x352   :  { %v832_v32 = vadd.f32 1.0, %v2948_v21  ;;  %v846_v37 = vmul.f32 %v830_v20, %v782_v27 }
 0x353   :  { %v847_v36 = vmul.f32 %v831_v25, %v783_v23 }
 0x354   :  { %v848_v35 = vmul.f32 %v832_v32, %v784_v29 }
 0x355   :  { %v857_v39 = vpack.c.bf16 %v847_v36, %v845_v33 }
 0x356   :  { %v2950_v38 = vpop.eup %2949  ;;  %v858_v41 = vpack.c.bf16 %v848_v35, %v846_v37  ;;  %v2832_v37 = vld [vmem:[%s3942_s6 + $0x24] ss:$8 sps:$4 sm:$0xff]   ;;  %v2830_v35 = vld [vmem:[%s3942_s6 + $0x20] ss:$8 sps:$4 sm:$0xff]  }
 0x357   :  { %v2952_v40 = vpop.eup %2951  ;;  %v833_v42 = vadd.f32 1.0, %v2950_v38  ;;  %v2835_v38 = vld [vmem:[%s3942_s6 + $0x34] ss:$8 sps:$4 sm:$0xff]  }
 0x358   :  { %v2954_v43 = vpop.eup %2953  ;;  %v834_v44 = vadd.f32 1.0, %v2952_v40  ;;  %876 = vmatprep.subr.bf16.mxu0 %v858_v41  ;;  %v2838_v40 = vld [vmem:[%s3942_s6 + $0x44] ss:$8 sps:$4 sm:$0xff]   ;;  %v2836_v41 = vld [vmem:[%s3942_s6 + $0x40] ss:$8 sps:$4 sm:$0xff]  }
 0x359   :  { %v2956_v45 = vpop.eup %2955  ;;  %v835_v46 = vadd.f32 1.0, %v2954_v43  ;;  %877 = vmatpush1.bf16.msra.mxu0 %v857_v39  ;;  %v849_v53 = vmul.f32 %v833_v42, %v785_v9  ;;  %v2833_v39 = vld [vmem:[%s3942_s6 + $0x30] ss:$8 sps:$4 sm:$0xff]   ;;  %v2841_v42 = vld [vmem:[%s3942_s6 + $0x54] ss:$8 sps:$4 sm:$0xff]  }
 0x35a   :  { %v836_v50 = vadd.f32 1.0, %v2956_v45  ;;  %v850_v56 = vmul.f32 %v834_v44, %v786_v16  ;;  %v2839_v43 = vld [vmem:[%s3942_s6 + $0x50] ss:$8 sps:$4 sm:$0xff]   ;;  %v2844_v44 = vld [vmem:[%s3942_s6 + $0x64] ss:$8 sps:$4 sm:$0xff]  }
 0x35b   :  { %v851_v55 = vmul.f32 %v835_v46, %v787_v31  ;;  %v2842_v45 = vld [vmem:[%s3942_s6 + $0x60] ss:$8 sps:$4 sm:$0xff]   ;;  %v2845_v9 = vld [vmem:[%s3942_s6 + $0x70] ss:$8 sps:$4 sm:$0xff]   ;;  %v2847_v31 = vld [vmem:[%s3942_s6 + $0x74] ss:$8 sps:$4 sm:$0xff]  }
 0x35c   :  { %v852_v58 = vmul.f32 %v836_v50, %v788_v34  ;;  %v2848_v46 = vld [vmem:[%s3943_s7 + $0x40] sm:$0xff]   ;;  %v2850_v34 = vld [vmem:[%s3943_s7 + $0x48] sm:$0xff]  }
 0x35d   :  { %v859_v59 = vpack.c.bf16 %v851_v55, %v849_v53  ;;  %v2849_v16 = vld [vmem:[%s3943_s7] sm:$0xff]   ;;  %v2851_v50 = vld [vmem:[%s3943_s7 + $0x8] sm:$0xff]  }
 0x35e   :  { %v860_v63 = vpack.c.bf16 %v852_v58, %v850_v56 }
 0x360   :  { %878 = vmatprep.subr.bf16.mxu0 %v860_v63 }
 0x361   :  { %879 = vmatpush1.bf16.msra.mxu0 %v859_v59 }
 0x362   :  { %2656 = vmatprep.subr.bf16.mxu0 %v2848_v46 }
 0x364   :  { %2447 = vmatmul.mubr.msk.bf16.vlgmr.msra.gmra.mrb[12].mxu0 %vm868_vm1, %v2823_v1 }
 0x365   :  { %2657 = vmatpush3.bf16.msra.mxu0 %v2849_v16 }
 0x366   :  { %2658 = vmatprep.subr.bf16.mxu0 %v2850_v34 }
 0x369   :  { %2659 = vmatpush3.bf16.msra.mxu0 %v2851_v50 }
 0x437   :  { %v906_v61 = vpop.f32.mrb[12].mxu0 }
 0x438   :  { %v907_v4 = vadd.f32 %v906_v61, %v590_v48  ;;  %v908_v5 = vpop.f32.mrb[13].mxu0 }
 0x439   :  { %v910_v6 = vpop.f32.mrb[14].mxu0  ;;  %v909_v10 = vadd.f32 %v908_v5, %v591_v2  ;;  %v3527_v5 = vsub.s32 2, %v3287_v51 }
 0x43a   :  { %v3431_v8 = vadd.f32 %v907_v4, %v3298_v26  ;;  %v911_v49 = vadd.f32 %v910_v6, %v592_v3  ;;  %v912_v57 = vpop.f32.mrb[15].mxu0  ;;  %v2824_v26 = vld [vmem:[%s3942_s6] ss:$8 sps:$4 sm:$0xff]  }
 0x43b   :  { %v913_v12 = vadd.f32 %v912_v57, %v593_v7  ;;  %v3438_v13 = vadd.f32 %v909_v10, %v3296_v24  ;;  %v2829_v24 = vld [vmem:[%s3942_s6 + $0x14] ss:$8 sps:$4 sm:$0xff]   ;;  %v966_v6 = vrot.slane %v3317_v62, %v3527_v5  ;;  %v3532_v7 = vsub.s32 3, %v3287_v51 }
 0x43c   :  { %v3434_v11 = vadd.f32 %v911_v49, %v3303_v30  ;;  %919 = vadd.xlane.f32.xlu0 %v3431_v8  ;;  %v2826_v30 = vld [vmem:[%s3942_s6 + $0x4] ss:$8 sps:$4 sm:$0xff]  }
 0x43d   :  { %v3442_v14 = vadd.f32 %v913_v12, %v3300_v28  ;;  %1088 = vmatprep.subr.bf16.mxu1 %v2826_v30  ;;  %v2827_v28 = vld [vmem:[%s3942_s6 + $0x10] ss:$8 sps:$4 sm:$0xff]   ;;  %v974_v30 = vrot.slane %v3317_v62, %v3532_v7 }
 0x43e   :  { %921 = vadd.xlane.f32.xlu1 %v3434_v11  ;;  %1089 = vmatpush1.bf16.msra.mxu1 %v2824_v26 }
 0x43f   :  { %1090 = vmatprep.subr.bf16.mxu1 %v2829_v24 }
 0x440   :  { %923 = vadd.xlane.f32.xlu0 %v3438_v13 }
 0x442   :  { %925 = vadd.xlane.f32.xlu1 %v3442_v14  ;;  %1091 = vmatpush1.bf16.msra.mxu1 %v2827_v28 }
 0x443   :  { %1092 = vmatprep.subr.bf16.mxu1 %v2832_v37  ;;  %v2857_v37 = vld [vmem:[%s3943_s7 + $0x20] sm:$0xff]  }
 0x446   :  { %1093 = vmatpush1.bf16.msra.mxu1 %v2830_v35  ;;  %v2858_v35 = vld [vmem:[%s3943_s7 + $0x68] sm:$0xff]  }
 0x447   :  { %1094 = vmatprep.subr.bf16.mxu1 %v2835_v38  ;;  %v2859_v38 = vld [vmem:[%s3943_s7 + $0x28] sm:$0xff]  }
 0x44a   :  { %1095 = vmatpush1.bf16.msra.mxu1 %v2833_v39  ;;  %v2860_v39 = vld [vmem:[%s3943_s7 + $0x70] sm:$0xff]  }
 0x44b   :  { %1096 = vmatprep.subr.bf16.mxu1 %v2838_v40  ;;  %v2861_v40 = vld [vmem:[%s3943_s7 + $0x30] sm:$0xff]  }
 0x44e   :  { %1097 = vmatpush1.bf16.msra.mxu1 %v2836_v41  ;;  %v2862_v41 = vld [vmem:[%s3943_s7 + $0x78] sm:$0xff]  }
 0x44f   :  { %1098 = vmatprep.subr.bf16.mxu1 %v2841_v42  ;;  %v2863_v42 = vld [vmem:[%s3943_s7 + $0x38] sm:$0xff]  }
 0x452   :  { %1099 = vmatpush1.bf16.msra.mxu1 %v2839_v43  ;;  %v2437_v43 = vld [vmem:[%s3941_s5 + $0xa0] ss:$8 sm:$0x3] }
 0x453   :  { %1100 = vmatprep.subr.bf16.mxu1 %v2844_v44  ;;  %v1001_v44 = vrot.slane %v2437_v43, %v3290_v52 }
 0x456   :  { %1101 = vmatpush1.bf16.msra.mxu1 %v2842_v45  ;;  %v1005_v45 = vrot.slane %v2437_v43, %v3320_v0 }
 0x457   :  { %1102 = vmatprep.subr.bf16.mxu1 %v2847_v31 }
 0x45a   :  { %1103 = vmatpush1.bf16.msra.mxu1 %v2845_v9 }
 0x4c9   :  { %v920_v15 = vpop.xlane.xlu0 %919 }
 0x4ca   :  { %v927_v17 = vmul.f32 0.0078125, %v920_v15 }
 0x4cb   :  { %v922_v18 = vpop.xlane.xlu1 %921 }
 0x4cc   :  { %v3459_v54 = vsub.f32 %v3431_v8, %v927_v17  ;;  %v928_v60 = vmul.f32 0.0078125, %v922_v18 }
 0x4cd   :  { %v924_v19 = vpop.xlane.xlu0 %923 }
 0x4ce   :  { %v3462_v20 = vsub.f32 %v3434_v11, %v928_v60  ;;  %v929_v21 = vmul.f32 0.0078125, %v924_v19  ;;  %v935_v22 = vmul.f32 %v3459_v54, %v3459_v54 }
 0x4cf   :  { %v926_v23 = vpop.xlane.xlu1 %925 }
 0x4d0   :  { %v3467_v25 = vsub.f32 %v3438_v13, %v929_v21  ;;  %v930_v27 = vmul.f32 0.0078125, %v926_v23  ;;  %939 = vadd.xlane.f32.xlu0 %v935_v22  ;;  %v936_v29 = vmul.f32 %v3462_v20, %v3462_v20 }
 0x4d2   :  { %v3472_v32 = vsub.f32 %v3442_v14, %v930_v27  ;;  %941 = vadd.xlane.f32.xlu1 %v936_v29  ;;  %v937_v33 = vmul.f32 %v3467_v25, %v3467_v25  ;;  %v2852_v29 = vld [vmem:[%s3943_s7 + $0x50] sm:$0xff]  }
 0x4d3   :  { %2660 = vmatprep.subr.bf16.mxu0 %v2852_v29 }
 0x4d4   :  { %943 = vadd.xlane.f32.xlu0 %v937_v33  ;;  %v938_v36 = vmul.f32 %v3472_v32, %v3472_v32  ;;  %v2855_v33 = vld [vmem:[%s3943_s7 + $0x18] sm:$0xff]  }
 0x4d6   :  { %945 = vadd.xlane.f32.xlu1 %v938_v36  ;;  %v2856_v36 = vld [vmem:[%s3943_s7 + $0x60] sm:$0xff]  }
 0x55d   :  { %v940_v53 = vpop.xlane.xlu0 %939 }
 0x55e   :  { %v947_v55 = vmul.f32 0.0078125, %v940_v53 }
 0x55f   :  { %v942_v56 = vpop.xlane.xlu1 %941 }
 0x560   :  { %v951_v58 = vadd.f32 1e-06, %v947_v55  ;;  %v948_v59 = vmul.f32 0.0078125, %v942_v56 }
 0x561   :  { %v944_v63 = vpop.xlane.xlu0 %943 }
 0x562   :  { %2957 = vrsqrt.f32 %v951_v58  ;;  %v952_v1 = vadd.f32 1e-06, %v948_v59  ;;  %v949_v48 = vmul.f32 0.0078125, %v944_v63 }
 0x563   :  { %v946_v61 = vpop.xlane.xlu1 %945 }
 0x564   :  { %2959 = vrsqrt.f32 %v952_v1  ;;  %v953_v2 = vadd.f32 1e-06, %v949_v48  ;;  %v950_v3 = vmul.f32 0.0078125, %v946_v61 }
 0x566   :  { %2961 = vrsqrt.f32 %v953_v2  ;;  %v954_v4 = vadd.f32 1e-06, %v950_v3 }
 0x568   :  { %2963 = vrsqrt.f32 %v954_v4 }
 0x56c   :  { %v2958_v10 = vpop.eup %2957 }
 0x56d   :  { %v959_v49 = vmul.f32 %v2958_v10, %v3459_v54 }
 0x56e   :  { %v2960_v57 = vpop.eup %2959 }
 0x56f   :  { %v967_v12 = vmul.f32 %v966_v6, %v959_v49  ;;  %v960_v26 = vmul.f32 %v2960_v57, %v3462_v20 }
 0x570   :  { %v2962_v24 = vpop.eup %2961 }
 0x571   :  { %v968_v28 = vmul.f32 %v966_v6, %v960_v26  ;;  %v975_v17 = vadd.f32 %v974_v30, %v967_v12  ;;  %v961_v60 = vmul.f32 %v2962_v24, %v3467_v25  ;;  %v2853_v25 = vld [vmem:[%s3943_s7 + $0x10] sm:$0xff]  }
 0x572   :  { %v2964_v15 = vpop.eup %2963  ;;  %2661 = vmatpush3.bf16.msra.mxu0 %v2853_v25 }
 0x573   :  { %v976_v18 = vadd.f32 %v974_v30, %v968_v28  ;;  %v962_v19 = vmul.f32 %v2964_v15, %v3472_v32  ;;  %v969_v54 = vmul.f32 %v966_v6, %v961_v60  ;;  %v2854_v32 = vld [vmem:[%s3943_s7 + $0x58] sm:$0xff]  }
 0x574   :  { %2662 = vmatprep.subr.bf16.mxu0 %v2854_v32 }
 0x575   :  { %v979_v21 = vpack.c.bf16 %v976_v18, %v975_v17  ;;  %v970_v22 = vmul.f32 %v966_v6, %v962_v19  ;;  %v977_v20 = vadd.f32 %v974_v30, %v969_v54 }
 0x576   :  { %2663 = vmatpush3.bf16.msra.mxu0 %v2855_v33 }
 0x577   :  { %1121 = vmatmul.mubr.bf16.vlgmr.msra.gmra.mrb[24].mxu1 %v979_v21  ;;  %v978_v23 = vadd.f32 %v974_v30, %v970_v22  ;;  %2664 = vmatprep.subr.bf16.mxu0 %v2856_v36 }
 0x578   :  { %1130 = vmatprep.mubr.bf16.mxu1 %v3078_v47 }
 0x579   :  { %v980_v27 = vpack.c.bf16 %v978_v23, %v977_v20 }
 0x57a   :  { %2665 = vmatpush3.bf16.msra.mxu0 %v2857_v37 }
 0x57b   :  { %2666 = vmatprep.subr.bf16.mxu0 %v2858_v35 }
 0x57e   :  { %2667 = vmatpush3.bf16.msra.mxu0 %v2859_v38 }
 0x57f   :  { %1131 = vmatmul.mubr.bf16.gmra.mrb[28].mxu1 %v980_v27  ;;  %2668 = vmatprep.subr.bf16.mxu0 %v2860_v39 }
 0x580   :  { %1533 = vmatprep.mubr.bf16.mxu1 %v3078_v47 }
 0x582   :  { %2669 = vmatpush3.bf16.msra.mxu0 %v2861_v40 }
 0x583   :  { %2670 = vmatprep.subr.bf16.mxu0 %v2862_v41 }
 0x586   :  { %2671 = vmatpush3.bf16.msra.mxu0 %v2863_v42 }
 0x64a   :  { %v1122_v9 = vpop.f32.mrb[24].mxu1 }
 0x64b   :  { %v1123_v31 = vadd.f32 %v1122_v9, %v1001_v44  ;;  %v1124_v46 = vpop.f32.mrb[25].mxu1 }
 0x64c   :  { %v1125_v16 = vadd.f32 %v1124_v46, %v1005_v45  ;;  %v1126_v34 = vpop.f32.mrb[26].mxu1 }
 0x64d   :  { %v1149_v50 = vmul.f32 0.70710677, %v1123_v31  ;;  %v1127_v53 = vadd.f32 %v1126_v34, %v1001_v44  ;;  %v1128_v55 = vpop.f32.mrb[27].mxu1  ;;  %v1141_v60 = vmul.f32 0.5, %v1123_v31 }
 0x64e   :  { %v1150_v56 = vmul.f32 0.70710677, %v1125_v16  ;;  %v1129_v58 = vadd.f32 %v1128_v55, %v1005_v45  ;;  %v1142_v22 = vmul.f32 0.5, %v1125_v16 }
 0x64f   :  { %2965 = verf.f32 %v1149_v50  ;;  %v1151_v59 = vmul.f32 0.70710677, %v1127_v53  ;;  %v1143_v19 = vmul.f32 0.5, %v1127_v53 }
 0x650   :  { %2967 = verf.f32 %v1150_v56  ;;  %v1152_v63 = vmul.f32 0.70710677, %v1129_v58  ;;  %v1144_v54 = vmul.f32 0.5, %v1129_v58 }
 0x651   :  { %2969 = verf.f32 %v1151_v59 }
 0x652   :  { %2971 = verf.f32 %v1152_v63  ;;  %v1132_v1 = vpop.f32.mrb[28].mxu1 }
 0x653   :  { %v1133_v48 = vadd.f32 %v1132_v1, %v1001_v44  ;;  %v1134_v61 = vpop.f32.mrb[29].mxu1 }
 0x654   :  { %v1135_v2 = vadd.f32 %v1134_v61, %v1005_v45  ;;  %v1136_v3 = vpop.f32.mrb[30].mxu1  ;;  %v1368_v61 = vsub.s32 4, %v3287_v51 }
 0x655   :  { %v1153_v4 = vmul.f32 0.70710677, %v1133_v48  ;;  %v1137_v6 = vadd.f32 %v1136_v3, %v1001_v44  ;;  %v1138_v10 = vpop.f32.mrb[31].mxu1  ;;  %v1145_v41 = vmul.f32 0.5, %v1133_v48 }
 0x656   :  { %v1154_v49 = vmul.f32 0.70710677, %v1135_v2  ;;  %v1139_v57 = vadd.f32 %v1138_v10, %v1005_v45  ;;  %v1146_v44 = vmul.f32 0.5, %v1135_v2 }
 0x657   :  { %2973 = verf.f32 %v1153_v4  ;;  %v1155_v12 = vmul.f32 0.70710677, %v1137_v6  ;;  %v1147_v42 = vmul.f32 0.5, %v1137_v6 }
 0x658   :  { %2975 = verf.f32 %v1154_v49  ;;  %v1156_v26 = vmul.f32 0.70710677, %v1139_v57  ;;  %v1148_v45 = vmul.f32 0.5, %v1139_v57  ;;  %v1369_v57 = vrot.slane %v3317_v62, %v1368_v61 }
 0x659   :  { %v2966_v30 = vpop.eup %2965  ;;  %2977 = verf.f32 %v1155_v12 }
 0x65a   :  { %v2968_v24 = vpop.eup %2967  ;;  %v1165_v28 = vadd.f32 1.0, %v2966_v30  ;;  %2979 = verf.f32 %v1156_v26 }
 0x65b   :  { %v2970_v15 = vpop.eup %2969  ;;  %v1166_v17 = vadd.f32 1.0, %v2968_v24 }
 0x65c   :  { %v2972_v18 = vpop.eup %2971  ;;  %v1167_v21 = vadd.f32 1.0, %v2970_v15  ;;  %v1173_v20 = vmul.f32 %v1165_v28, %v1141_v60 }
 0x65d   :  { %v1168_v23 = vadd.f32 1.0, %v2972_v18  ;;  %v1174_v29 = vmul.f32 %v1166_v17, %v1142_v22 }
 0x65e   :  { %v1175_v27 = vmul.f32 %v1167_v21, %v1143_v19 }
 0x65f   :  { %v1176_v25 = vmul.f32 %v1168_v23, %v1144_v54 }
 0x660   :  { %v1181_v32 = vpack.c.bf16 %v1175_v27, %v1173_v20 }
 0x661   :  { %v2974_v33 = vpop.eup %2973  ;;  %v1182_v36 = vpack.c.bf16 %v1176_v25, %v1174_v29 }
 0x662   :  { %v2976_v37 = vpop.eup %2975  ;;  %v1169_v35 = vadd.f32 1.0, %v2974_v33 }
 0x663   :  { %v2978_v38 = vpop.eup %2977  ;;  %v1170_v39 = vadd.f32 1.0, %v2976_v37  ;;  %1345 = vmatprep.mubr.bf16.mxu0 %v1182_v36 }
 0x664   :  { %v2980_v40 = vpop.eup %2979  ;;  %v1171_v43 = vadd.f32 1.0, %v2978_v38  ;;  %1346 = vmatmul.mubr.bf16.vlgmr.msra.gmra.mrb[16].mxu0 %v1181_v32  ;;  %v1177_v31 = vmul.f32 %v1169_v35, %v1145_v41 }
 0x665   :  { %v1172_v9 = vadd.f32 1.0, %v2980_v40  ;;  %v1178_v16 = vmul.f32 %v1170_v39, %v1146_v44 }
 0x666   :  { %v1179_v46 = vmul.f32 %v1171_v43, %v1147_v42 }
 0x667   :  { %v1180_v34 = vmul.f32 %v1172_v9, %v1148_v45  ;;  %v3611_v45 = vld [vmem:[%s3938_s2 + $0x8] sm:$0x1f] }
 0x668   :  { %v1183_v50 = vpack.c.bf16 %v1179_v46, %v1177_v31  ;;  %v1445_v9 = vrot.slane %v3611_v45, %v3290_v52 }
 0x669   :  { %v1184_v53 = vpack.c.bf16 %v1180_v34, %v1178_v16 }
 0x66b   :  { %1353 = vmatprep.mubr.bf16.mxu0 %v1184_v53  ;;  %v1453_v53 = vrot.slane %v3611_v45, %v3320_v0 }
 0x66c   :  { %1354 = vmatmul.mubr.bf16.gmra.mrb[20].mxu0 %v1183_v50 }
 0x66d   :  { %1705 = vmatprep.mubr.bf16.mxu0 %v3078_v47 }
 0x737   :  { %v2672_v55 = vpop.f32.mrb[16].mxu0 }
 0x738   :  { %v2673_v56 = vpop.f32.mrb[17].mxu0 }
 0x739   :  { %v2674_v58 = vadd.f32 %v2673_v56, %v2672_v55  ;;  %v2675_v59 = vpop.f32.mrb[18].mxu0 }
 0x73a   :  { %v2676_v63 = vpop.f32.mrb[19].mxu0 }
 0x73b   :  { %v2677_v1 = vadd.f32 %v2676_v63, %v2675_v59  ;;  %v1362_v12 = vadd.f32 %v2674_v58, %v3431_v8 }
 0x73d   :  { %v1363_v24 = vadd.f32 %v2677_v1, %v3434_v11 }
 0x73f   :  { %v2678_v48 = vpop.f32.mrb[20].mxu0  ;;  %v3601_v15 = vadd.f32 %v1369_v57, %v1363_v24  ;;  %v2867_v24 = vld [vmem:[%s3939_s3 + $0x38] sm:$0xff]  }
 0x740   :  { %v2679_v2 = vpop.f32.mrb[21].mxu0 }
 0x741   :  { %v2680_v3 = vadd.f32 %v2679_v2, %v2678_v48  ;;  %v2681_v4 = vpop.f32.mrb[22].mxu0 }
 0x742   :  { %v2682_v6 = vpop.f32.mrb[23].mxu0 }
 0x743   :  { %v1364_v10 = vadd.f32 %v2680_v3, %v3438_v13  ;;  %v2683_v49 = vadd.f32 %v2682_v6, %v2681_v4  ;;  %v3598_v13 = vadd.f32 %v1369_v57, %v1362_v12  ;;  %v2865_v12 = vld [vmem:[%s3939_s3 + $0x28] sm:$0xff]  }
 0x745   :  { %v1365_v26 = vadd.f32 %v2683_v49, %v3442_v14  ;;  %v3591_v30 = vadd.f32 %v1369_v57, %v1364_v10 }
 0x747   :  { %1402 = vadd.xlane.f32.xlu0 %v3591_v30  ;;  %v3595_v28 = vadd.f32 %v1369_v57, %v1365_v26  ;;  %v2864_v57 = vld [vmem:[%s3939_s3 + $0x20] sm:$0xff]   ;;  %v2866_v26 = vld [vmem:[%s3939_s3 + $0x30] sm:$0xff]  }
 0x749   :  { %1404 = vadd.xlane.f32.xlu1 %v3595_v28 }
 0x74b   :  { %1398 = vadd.xlane.f32.xlu0 %v3598_v13 }
 0x74d   :  { %1400 = vadd.xlane.f32.xlu1 %v3601_v15 }
 0x7d4   :  { %v1403_v62 = vpop.xlane.xlu0 %1402 }
 0x7d5   :  { %v1408_v8 = vmul.f32 0.0078125, %v1403_v62  ;;  %v1376_v62 = vld [vmem:[%s3941_s5 + $0xb0] sm:$0xff] }
 0x7d6   :  { %v1405_v14 = vpop.xlane.xlu1 %1404 }
 0x7d7   :  { %v1412_v17 = vsub.f32 %v3591_v30, %v1408_v8  ;;  %v1409_v11 = vmul.f32 0.0078125, %v1405_v14  ;;  %v1377_v8 = vld [vmem:[%s3941_s5 + $0xb8] sm:$0xff] }
 0x7d8   :  { %v1399_v18 = vpop.xlane.xlu0 %1398 }
 0x7d9   :  { %v1413_v60 = vsub.f32 %v3595_v28, %v1409_v11  ;;  %v1406_v19 = vmul.f32 0.0078125, %v1399_v18  ;;  %v1416_v21 = vmul.f32 %v1412_v17, %v1412_v17 }
 0x7da   :  { %v1401_v22 = vpop.xlane.xlu1 %1400 }
 0x7db   :  { %v1410_v54 = vsub.f32 %v3598_v13, %v1406_v19  ;;  %v1407_v23 = vmul.f32 0.0078125, %v1401_v22  ;;  %1422 = vadd.xlane.f32.xlu0 %v1416_v21  ;;  %v1417_v20 = vmul.f32 %v1413_v60, %v1413_v60 }
 0x7dd   :  { %v1411_v27 = vsub.f32 %v3601_v15, %v1407_v23  ;;  %1424 = vadd.xlane.f32.xlu1 %v1417_v20  ;;  %v1414_v29 = vmul.f32 %v1410_v54, %v1410_v54 }
 0x7df   :  { %1418 = vadd.xlane.f32.xlu0 %v1414_v29  ;;  %v1415_v25 = vmul.f32 %v1411_v27, %v1411_v27 }
 0x7e1   :  { %1420 = vadd.xlane.f32.xlu1 %v1415_v25 }
 0x868   :  { %v1423_v32 = vpop.xlane.xlu0 %1422 }
 0x869   :  { %v1428_v33 = vmul.f32 0.0078125, %v1423_v32  ;;  %v1380_v32 = vld [vmem:[%s3941_s5 + $0xd0] sm:$0xff] }
 0x86a   :  { %v1425_v36 = vpop.xlane.xlu1 %1424 }
 0x86b   :  { %v1432_v37 = vadd.f32 1e-06, %v1428_v33  ;;  %v1429_v35 = vmul.f32 0.0078125, %v1425_v36  ;;  %v1381_v33 = vld [vmem:[%s3941_s5 + $0xd8] sm:$0xff] }
 0x86c   :  { %v1419_v38 = vpop.xlane.xlu0 %1418 }
 0x86d   :  { %2981 = vrsqrt.f32 %v1432_v37  ;;  %v1433_v39 = vadd.f32 1e-06, %v1429_v35  ;;  %v1426_v40 = vmul.f32 0.0078125, %v1419_v38  ;;  %v1382_v37 = vld [vmem:[%s3941_s5 + $0xe0] sm:$0xff] }
 0x86e   :  { %v1421_v41 = vpop.xlane.xlu1 %1420 }
 0x86f   :  { %2983 = vrsqrt.f32 %v1433_v39  ;;  %v1430_v42 = vadd.f32 1e-06, %v1426_v40  ;;  %v1427_v43 = vmul.f32 0.0078125, %v1421_v41  ;;  %v1383_v39 = vld [vmem:[%s3941_s5 + $0xe8] sm:$0xff] }
 0x871   :  { %2985 = vrsqrt.f32 %v1430_v42  ;;  %v1431_v44 = vadd.f32 1e-06, %v1427_v43 }
 0x873   :  { %2987 = vrsqrt.f32 %v1431_v44 }
 0x877   :  { %v2982_v31 = vpop.eup %2981 }
 0x878   :  { %v1440_v46 = vmul.f32 %v2982_v31, %v1412_v17  ;;  %v1378_v17 = vld [vmem:[%s3941_s5 + $0xc0] sm:$0xff] }
 0x879   :  { %v2984_v16 = vpop.eup %2983 }
 0x87a   :  { %v1441_v34 = vmul.f32 %v2984_v16, %v1413_v60  ;;  %v1448_v50 = vmul.f32 %v1445_v9, %v1440_v46  ;;  %v1379_v60 = vld [vmem:[%s3941_s5 + $0xc8] sm:$0xff] }
 0x87b   :  { %v2986_v55 = vpop.eup %2985 }
 0x87c   :  { %v1438_v56 = vmul.f32 %v2986_v55, %v1410_v54  ;;  %v1449_v58 = vmul.f32 %v1445_v9, %v1441_v34  ;;  %v1456_v1 = vadd.f32 %v1453_v53, %v1448_v50  ;;  %v1384_v34 = vld [vmem:[%s3941_s5 + $0xf0] sm:$0xff] }
 0x87d   :  { %v2988_v59 = vpop.eup %2987 }
 0x87e   :  { %v1439_v63 = vmul.f32 %v2988_v59, %v1411_v27  ;;  %v1457_v48 = vadd.f32 %v1453_v53, %v1449_v58  ;;  %v1446_v2 = vmul.f32 %v1445_v9, %v1438_v56 }
 0x880   :  { %v1459_v3 = vpack.c.bf16 %v1457_v48, %v1456_v1  ;;  %v1447_v4 = vmul.f32 %v1445_v9, %v1439_v63  ;;  %v1454_v6 = vadd.f32 %v1453_v53, %v1446_v2  ;;  %v1386_v2 = vld [vmem:[%s3941_s5 + $0x100] sm:$0xff] }
 0x882   :  { %1501 = vmatprep.subr.bf16.mxu1 %v1459_v3  ;;  %v1455_v10 = vadd.f32 %v1453_v53, %v1447_v4  ;;  %v1385_v53 = vld [vmem:[%s3941_s5 + $0xf8] sm:$0xff] }
 0x884   :  { %v1458_v49 = vpack.c.bf16 %v1455_v10, %v1454_v6 }
 0x886   :  { %1502 = vmatpush1.bf16.msra.mxu1 %v1458_v49 }
 0x889   :  { %2494 = vmatmul.mubr.msk.bf16.vlgmr.msra.gmra.mrb[32].mxu1 %vm687_vm0, %v2864_v57 }
 0x88a   :  { %1543 = vmatprep.mubr.bf16.mxu1 %v3078_v47 }
 0x891   :  { %2495 = vmatmul.mubr.msk.bf16.gmra.mrb[36].mxu1 %vm687_vm0, %v2865_v12  ;;  %v1387_v12 = vld [vmem:[%s3941_s5 + $0x108] sm:$0xff] }
 0x892   :  { %1553 = vmatprep.mubr.bf16.mxu1 %v3078_v47 }
 0x899   :  { %2496 = vmatmul.mubr.msk.bf16.gmra.mrb[40].mxu1 %vm687_vm0, %v2866_v26 }
 0x89a   :  { %1563 = vmatprep.mubr.bf16.mxu1 %v3078_v47 }
 0x8a1   :  { %2497 = vmatmul.mubr.msk.bf16.gmra.mrb[44].mxu1 %vm687_vm0, %v2867_v24 }
 0x8a2   :  { %1922 = vmatprep.mubr.bf16.mxu1 %v3078_v47 }
 0x95c   :  { %v1535_v14 = vpop.f32.mrb[32].mxu1 }
 0x95d   :  { %v1536_v11 = vadd.f32 %v1535_v14, %v1376_v62  ;;  %v1537_v18 = vpop.f32.mrb[33].mxu1 }
 0x95e   :  { %v1538_v19 = vadd.f32 %v1537_v18, %v1377_v8  ;;  %v1539_v21 = vpop.f32.mrb[34].mxu1 }
 0x95f   :  { %v1590_v22 = vmul.f32 0.70710677, %v1536_v11  ;;  %v1540_v54 = vadd.f32 %v1539_v21, %v1378_v17  ;;  %v1541_v23 = vpop.f32.mrb[35].mxu1  ;;  %v1574_v4 = vmul.f32 0.5, %v1536_v11 }
 0x960   :  { %v1591_v20 = vmul.f32 0.70710677, %v1538_v19  ;;  %v1542_v27 = vadd.f32 %v1541_v23, %v1379_v60  ;;  %v1575_v26 = vmul.f32 0.5, %v1538_v19  ;;  %v1388_v19 = vld [vmem:[%s3941_s5 + $0x110] sm:$0xff] }
 0x961   :  { %2989 = verf.f32 %v1590_v22  ;;  %v1592_v29 = vmul.f32 0.70710677, %v1540_v54  ;;  %v1576_v6 = vmul.f32 0.5, %v1540_v54 }
 0x962   :  { %2991 = verf.f32 %v1591_v20  ;;  %v1593_v25 = vmul.f32 0.70710677, %v1542_v27  ;;  %v1577_v24 = vmul.f32 0.5, %v1542_v27 }
 0x963   :  { %2993 = verf.f32 %v1592_v29 }
 0x964   :  { %2995 = verf.f32 %v1593_v25  ;;  %v1545_v36 = vpop.f32.mrb[36].mxu1  ;;  %v1389_v25 = vld [vmem:[%s3941_s5 + $0x118] sm:$0xff] }
 0x965   :  { %v3658_v35 = vadd.f32 %v1545_v36, %v1380_v32  ;;  %v1547_v38 = vpop.f32.mrb[37].mxu1 }
 0x966   :  { %v3663_v40 = vadd.f32 %v1547_v38, %v1381_v33  ;;  %v1549_v41 = vpop.f32.mrb[38].mxu1 }
 0x967   :  { %v1594_v42 = vmul.f32 0.70710677, %v3658_v35  ;;  %v1550_v43 = vadd.f32 %v1549_v41, %v1382_v37  ;;  %v1551_v44 = vpop.f32.mrb[39].mxu1 }
 0x968   :  { %v1595_v9 = vmul.f32 0.70710677, %v3663_v40  ;;  %v3667_v31 = vadd.f32 %v1551_v44, %v1383_v39  ;;  %v1390_v44 = vld [vmem:[%s3941_s5 + $0x120] sm:$0xff] }
 0x969   :  { %2997 = verf.f32 %v1594_v42  ;;  %v1596_v46 = vmul.f32 0.70710677, %v1550_v43 }
 0x96a   :  { %2999 = verf.f32 %v1595_v9  ;;  %v1597_v16 = vmul.f32 0.70710677, %v3667_v31 }
 0x96b   :  { %v2990_v50 = vpop.eup %2989  ;;  %3001 = verf.f32 %v1596_v46  ;;  %v1578_v46 = vmul.f32 0.5, %v3658_v35 }
 0x96c   :  { %v2992_v55 = vpop.eup %2991  ;;  %v1622_v56 = vadd.f32 1.0, %v2990_v50  ;;  %3003 = verf.f32 %v1597_v16  ;;  %v1555_v58 = vpop.f32.mrb[40].mxu1  ;;  %v1580_v16 = vmul.f32 0.5, %v1550_v43 }
 0x96d   :  { %v2994_v59 = vpop.eup %2993  ;;  %v1623_v63 = vadd.f32 1.0, %v2992_v55  ;;  %v3676_v1 = vadd.f32 %v1555_v58, %v1384_v34  ;;  %v1557_v48 = vpop.f32.mrb[41].mxu1  ;;  %v1391_v55 = vld [vmem:[%s3941_s5 + $0x128] sm:$0xff]  ;;  %v1581_v58 = vmul.f32 0.5, %v3667_v31 }
 0x96e   :  { %v2996_v3 = vpop.eup %2995  ;;  %v1624_v10 = vadd.f32 1.0, %v2994_v59  ;;  %v3681_v49 = vadd.f32 %v1557_v48, %v1385_v53  ;;  %v1559_v57 = vpop.f32.mrb[42].mxu1  ;;  %v1638_v17 = vmul.f32 %v1622_v56, %v1574_v4  ;;  %v1579_v56 = vmul.f32 0.5, %v3663_v40 }
 0x96f   :  { %v1625_v62 = vadd.f32 1.0, %v2996_v3  ;;  %v1598_v8 = vmul.f32 0.70710677, %v3676_v1  ;;  %v1561_v14 = vpop.f32.mrb[43].mxu1  ;;  %v1560_v11 = vadd.f32 %v1559_v57, %v1386_v2  ;;  %v1639_v21 = vmul.f32 %v1623_v63, %v1575_v26 }
 0x970   :  { %v1640_v18 = vmul.f32 %v1624_v10, %v1576_v6  ;;  %v1599_v60 = vmul.f32 0.70710677, %v3681_v49  ;;  %v1562_v54 = vadd.f32 %v1561_v14, %v1387_v12 }
 0x971   :  { %v1641_v22 = vmul.f32 %v1625_v62, %v1577_v24  ;;  %3005 = verf.f32 %v1598_v8  ;;  %v1600_v20 = vmul.f32 0.70710677, %v1560_v11 }
 0x972   :  { %v1654_v23 = vpack.c.bf16 %v1640_v18, %v1638_v17  ;;  %3007 = verf.f32 %v1599_v60  ;;  %v1601_v29 = vmul.f32 0.70710677, %v1562_v54  ;;  %v1582_v18 = vmul.f32 0.5, %v3676_v1 }
 0x973   :  { %v2998_v27 = vpop.eup %2997  ;;  %v1655_v32 = vpack.c.bf16 %v1641_v22, %v1639_v21  ;;  %3009 = verf.f32 %v1600_v20  ;;  %v1584_v60 = vmul.f32 0.5, %v1560_v11  ;;  %v1583_v22 = vmul.f32 0.5, %v3681_v49 }
 0x974   :  { %v3000_v33 = vpop.eup %2999  ;;  %v1626_v36 = vadd.f32 1.0, %v2998_v27  ;;  %v1565_v37 = vpop.f32.mrb[44].mxu1  ;;  %3011 = verf.f32 %v1601_v29 }
 0x975   :  { %v3002_v38 = vpop.eup %3001  ;;  %v1627_v39 = vadd.f32 1.0, %v3000_v33  ;;  %v1566_v41 = vadd.f32 %v1565_v37, %v1388_v19  ;;  %v1567_v42 = vpop.f32.mrb[45].mxu1  ;;  %1673 = vmatprep.subr.bf16.mxu0 %v1655_v32 }
 0x976   :  { %v3004_v9 = vpop.eup %3003  ;;  %v1628_v34 = vadd.f32 1.0, %v3002_v38  ;;  %v1568_v50 = vadd.f32 %v1567_v42, %v1389_v25  ;;  %v1569_v53 = vpop.f32.mrb[46].mxu1  ;;  %1674 = vmatpush1.bf16.msra.mxu0 %v1654_v23  ;;  %v1642_v2 = vmul.f32 %v1626_v36, %v1578_v46  ;;  %v1585_v23 = vmul.f32 0.5, %v1562_v54 }
 0x977   :  { %v1629_v59 = vadd.f32 1.0, %v3004_v9  ;;  %v1602_v63 = vmul.f32 0.70710677, %v1566_v41  ;;  %v1571_v48 = vpop.f32.mrb[47].mxu1  ;;  %v1570_v35 = vadd.f32 %v1569_v53, %v1390_v44  ;;  %v1643_v43 = vmul.f32 %v1627_v39, %v1579_v56 }
 0x978   :  { %v1644_v3 = vmul.f32 %v1628_v34, %v1580_v16  ;;  %v1603_v4 = vmul.f32 0.70710677, %v1568_v50  ;;  %v1572_v10 = vadd.f32 %v1571_v48, %v1391_v55  ;;  %v1586_v1 = vmul.f32 0.5, %v1566_v41  ;;  %v1392_v41 = vld [vmem:[%s3941_s5 + $0x130] sm:$0xff]  ;;  %v1394_v48 = vld [vmem:[%s3941_s5 + $0x140] sm:$0xff] }
 0x979   :  { %v1645_v6 = vmul.f32 %v1629_v59, %v1581_v58  ;;  %3013 = verf.f32 %v1602_v63  ;;  %v1604_v12 = vmul.f32 0.70710677, %v1570_v35  ;;  %v1588_v11 = vmul.f32 0.5, %v1570_v35  ;;  %v2868_v59 = vld [vmem:[%s3940_s4 + $0x8] sm:$0xff]   ;;  %v1393_v63 = vld [vmem:[%s3941_s5 + $0x138] sm:$0xff] }
 0x97a   :  { %v1656_v57 = vpack.c.bf16 %v1644_v3, %v1642_v2  ;;  %3015 = verf.f32 %v1603_v4  ;;  %v1605_v24 = vmul.f32 0.70710677, %v1572_v10  ;;  %v1587_v49 = vmul.f32 0.5, %v1568_v50  ;;  %v1395_v35 = vld [vmem:[%s3941_s5 + $0x148] sm:$0xff] }
 0x97b   :  { %v3006_v26 = vpop.eup %3005  ;;  %v1657_v62 = vpack.c.bf16 %v1645_v6, %v1643_v43  ;;  %3017 = verf.f32 %v1604_v12  ;;  %v1589_v54 = vmul.f32 0.5, %v1572_v10 }
 0x97c   :  { %v3008_v40 = vpop.eup %3007  ;;  %v1630_v31 = vadd.f32 1.0, %v3006_v26  ;;  %3019 = verf.f32 %v1605_v24 }
 0x97d   :  { %1675 = vmatprep.subr.bf16.mxu0 %v1657_v62  ;;  %v3010_v8 = vpop.eup %3009  ;;  %v1631_v14 = vadd.f32 1.0, %v3008_v40 }
 0x97e   :  { %1676 = vmatpush1.bf16.msra.mxu0 %v1656_v57  ;;  %v3012_v17 = vpop.eup %3011  ;;  %v1632_v21 = vadd.f32 1.0, %v3010_v8  ;;  %v1646_v19 = vmul.f32 %v1630_v31, %v1582_v18 }
 0x97f   :  { %v1633_v20 = vadd.f32 1.0, %v3012_v17  ;;  %v1647_v29 = vmul.f32 %v1631_v14, %v1583_v22 }
 0x980   :  { %v1648_v27 = vmul.f32 %v1632_v21, %v1584_v60 }
 0x981   :  { %v1649_v25 = vmul.f32 %v1633_v20, %v1585_v23 }
 0x982   :  { %v1658_v33 = vpack.c.bf16 %v1648_v27, %v1646_v19 }
 0x983   :  { %v3014_v32 = vpop.eup %3013  ;;  %v1659_v37 = vpack.c.bf16 %v1649_v25, %v1647_v29 }
 0x984   :  { %v3016_v36 = vpop.eup %3015  ;;  %v1634_v38 = vadd.f32 1.0, %v3014_v32 }
 0x985   :  { %v3018_v39 = vpop.eup %3017  ;;  %v1635_v42 = vadd.f32 1.0, %v3016_v36  ;;  %1677 = vmatprep.subr.bf16.mxu0 %v1659_v37  ;;  %v2875_v36 = vld [vmem:[%s3942_s6 + $0xa0] ss:$8 sps:$4 sm:$0xff]   ;;  %v2880_v37 = vld [vmem:[%s3942_s6 + $0xb4] ss:$8 sps:$4 sm:$0xff]  }
 0x986   :  { %v3020_v44 = vpop.eup %3019  ;;  %v1636_v9 = vadd.f32 1.0, %v3018_v39  ;;  %1678 = vmatpush1.bf16.msra.mxu0 %v1658_v33  ;;  %v1650_v16 = vmul.f32 %v1634_v38, %v1586_v1  ;;  %v2877_v33 = vld [vmem:[%s3942_s6 + $0xa4] ss:$8 sps:$4 sm:$0xff]   ;;  %v2878_v38 = vld [vmem:[%s3942_s6 + $0xb0] ss:$8 sps:$4 sm:$0xff]  }
 0x987   :  { %v1637_v46 = vadd.f32 1.0, %v3020_v44  ;;  %v1651_v53 = vmul.f32 %v1635_v42, %v1587_v49  ;;  %v2883_v39 = vld [vmem:[%s3942_s6 + $0xc4] ss:$8 sps:$4 sm:$0xff]   ;;  %v2881_v42 = vld [vmem:[%s3942_s6 + $0xc0] ss:$8 sps:$4 sm:$0xff]  }
 0x988   :  { %v1652_v34 = vmul.f32 %v1636_v9, %v1588_v11  ;;  %v2886_v44 = vld [vmem:[%s3942_s6 + $0xd4] ss:$8 sps:$4 sm:$0xff]   ;;  %v2884_v1 = vld [vmem:[%s3942_s6 + $0xd0] ss:$8 sps:$4 sm:$0xff]   ;;  %v2889_v11 = vld [vmem:[%s3942_s6 + $0xe4] ss:$8 sps:$4 sm:$0xff]  }
 0x989   :  { %v1653_v55 = vmul.f32 %v1637_v46, %v1589_v54  ;;  %v2887_v9 = vld [vmem:[%s3942_s6 + $0xe0] ss:$8 sps:$4 sm:$0xff]   ;;  %v2890_v49 = vld [vmem:[%s3942_s6 + $0xf0] ss:$8 sps:$4 sm:$0xff]   ;;  %v2892_v54 = vld [vmem:[%s3942_s6 + $0xf4] ss:$8 sps:$4 sm:$0xff]  }
 0x98a   :  { %v1660_v56 = vpack.c.bf16 %v1652_v34, %v1650_v16  ;;  %v2893_v46 = vld [vmem:[%s3943_s7 + $0xc0] sm:$0xff]   ;;  %v2895_v34 = vld [vmem:[%s3943_s7 + $0xc8] sm:$0xff]  }
 0x98b   :  { %v1661_v58 = vpack.c.bf16 %v1653_v55, %v1651_v53  ;;  %v2894_v16 = vld [vmem:[%s3943_s7 + $0x80] sm:$0xff]   ;;  %v2896_v53 = vld [vmem:[%s3943_s7 + $0x88] sm:$0xff]  }
 0x98d   :  { %1679 = vmatprep.subr.bf16.mxu0 %v1661_v58 }
 0x98e   :  { %1680 = vmatpush1.bf16.msra.mxu0 %v1660_v56 }
 0x98f   :  { %2684 = vmatprep.subr.bf16.mxu0 %v2893_v46 }
 0x991   :  { %2501 = vmatmul.mubr.msk.bf16.vlgmr.msra.gmra.mrb[24].mxu0 %vm868_vm1, %v2868_v59 }
 0x992   :  { %2685 = vmatpush3.bf16.msra.mxu0 %v2894_v16 }
 0x993   :  { %2686 = vmatprep.subr.bf16.mxu0 %v2895_v34 }
 0x996   :  { %2687 = vmatpush3.bf16.msra.mxu0 %v2896_v53 }
 0xa64   :  { %v1707_v50 = vpop.f32.mrb[24].mxu0 }
 0xa65   :  { %v1708_v2 = vadd.f32 %v1707_v50, %v1392_v41  ;;  %v1709_v3 = vpop.f32.mrb[25].mxu0 }
 0xa66   :  { %v1711_v4 = vpop.f32.mrb[26].mxu0  ;;  %v1710_v6 = vadd.f32 %v1709_v3, %v1393_v63 }
 0xa67   :  { %v3722_v43 = vadd.f32 %v1708_v2, %v3598_v13  ;;  %v1712_v10 = vadd.f32 %v1711_v4, %v1394_v48  ;;  %v1713_v57 = vpop.f32.mrb[27].mxu0  ;;  %v2869_v13 = vld [vmem:[%s3942_s6 + $0x80] ss:$8 sps:$4 sm:$0xff]  }
 0xa68   :  { %v1714_v26 = vadd.f32 %v1713_v57, %v1395_v35  ;;  %v3729_v24 = vadd.f32 %v1710_v6, %v3591_v30  ;;  %v2874_v30 = vld [vmem:[%s3942_s6 + $0x94] ss:$8 sps:$4 sm:$0xff]   ;;  %v1767_v6 = vrot.slane %v3611_v45, %v3527_v5 }
 0xa69   :  { %v3725_v12 = vadd.f32 %v1712_v10, %v3601_v15  ;;  %1720 = vadd.xlane.f32.xlu0 %v3722_v43  ;;  %v2871_v15 = vld [vmem:[%s3942_s6 + $0x84] ss:$8 sps:$4 sm:$0xff]  }
 0xa6a   :  { %v3733_v62 = vadd.f32 %v1714_v26, %v3595_v28  ;;  %1890 = vmatprep.subr.bf16.mxu1 %v2871_v15  ;;  %v2872_v28 = vld [vmem:[%s3942_s6 + $0x90] ss:$8 sps:$4 sm:$0xff]  }
 0xa6b   :  { %1722 = vadd.xlane.f32.xlu1 %v3725_v12  ;;  %1891 = vmatpush1.bf16.msra.mxu1 %v2869_v13 }
 0xa6c   :  { %1892 = vmatprep.subr.bf16.mxu1 %v2874_v30  ;;  %v1775_v30 = vrot.slane %v3611_v45, %v3532_v7 }
 0xa6d   :  { %1724 = vadd.xlane.f32.xlu0 %v3729_v24 }
 0xa6f   :  { %1726 = vadd.xlane.f32.xlu1 %v3733_v62  ;;  %1893 = vmatpush1.bf16.msra.mxu1 %v2872_v28 }
 0xa70   :  { %1894 = vmatprep.subr.bf16.mxu1 %v2877_v33  ;;  %v2902_v33 = vld [vmem:[%s3943_s7 + $0xa0] sm:$0xff]  }
 0xa73   :  { %1895 = vmatpush1.bf16.msra.mxu1 %v2875_v36  ;;  %v2903_v36 = vld [vmem:[%s3943_s7 + $0xe8] sm:$0xff]  }
 0xa74   :  { %1896 = vmatprep.subr.bf16.mxu1 %v2880_v37  ;;  %v2904_v37 = vld [vmem:[%s3943_s7 + $0xa8] sm:$0xff]  }
 0xa77   :  { %1897 = vmatpush1.bf16.msra.mxu1 %v2878_v38  ;;  %v2905_v38 = vld [vmem:[%s3943_s7 + $0xf0] sm:$0xff]  }
 0xa78   :  { %1898 = vmatprep.subr.bf16.mxu1 %v2883_v39  ;;  %v2906_v39 = vld [vmem:[%s3943_s7 + $0xb0] sm:$0xff]  }
 0xa7b   :  { %1899 = vmatpush1.bf16.msra.mxu1 %v2881_v42  ;;  %v2907_v42 = vld [vmem:[%s3943_s7 + $0xf8] sm:$0xff]  }
 0xa7c   :  { %1900 = vmatprep.subr.bf16.mxu1 %v2886_v44  ;;  %v2908_v44 = vld [vmem:[%s3943_s7 + $0xb8] sm:$0xff]  }
 0xa7f   :  { %1901 = vmatpush1.bf16.msra.mxu1 %v2884_v1  ;;  %v2481_v1 = vld [vmem:[%s3941_s5 + $0x150] ss:$8 sm:$0x3] }
 0xa80   :  { %1902 = vmatprep.subr.bf16.mxu1 %v2889_v11  ;;  %v1803_v11 = vrot.slane %v2481_v1, %v3290_v52 }
 0xa83   :  { %1903 = vmatpush1.bf16.msra.mxu1 %v2887_v9  ;;  %v1807_v9 = vrot.slane %v2481_v1, %v3320_v0 }
 0xa84   :  { %1904 = vmatprep.subr.bf16.mxu1 %v2892_v54 }
 0xa87   :  { %1905 = vmatpush1.bf16.msra.mxu1 %v2890_v49 }
 0xaf6   :  { %v1721_v40 = vpop.xlane.xlu0 %1720 }
 0xaf7   :  { %v1728_v31 = vmul.f32 0.0078125, %v1721_v40 }
 0xaf8   :  { %v1723_v8 = vpop.xlane.xlu1 %1722 }
 0xaf9   :  { %v3750_v14 = vsub.f32 %v3722_v43, %v1728_v31  ;;  %v1729_v17 = vmul.f32 0.0078125, %v1723_v8 }
 0xafa   :  { %v1725_v18 = vpop.xlane.xlu0 %1724 }
 0xafb   :  { %v3753_v60 = vsub.f32 %v3725_v12, %v1729_v17  ;;  %v1730_v21 = vmul.f32 0.0078125, %v1725_v18  ;;  %v1736_v22 = vmul.f32 %v3750_v14, %v3750_v14 }
 0xafc   :  { %v1727_v23 = vpop.xlane.xlu1 %1726 }
 0xafd   :  { %v3758_v20 = vsub.f32 %v3729_v24, %v1730_v21  ;;  %v1731_v19 = vmul.f32 0.0078125, %v1727_v23  ;;  %1740 = vadd.xlane.f32.xlu0 %v1736_v22  ;;  %v1737_v27 = vmul.f32 %v3753_v60, %v3753_v60 }
 0xaff   :  { %v3763_v29 = vsub.f32 %v3733_v62, %v1731_v19  ;;  %1742 = vadd.xlane.f32.xlu1 %v1737_v27  ;;  %v1738_v25 = vmul.f32 %v3758_v20, %v3758_v20 }
 0xb01   :  { %1744 = vadd.xlane.f32.xlu0 %v1738_v25  ;;  %v1739_v32 = vmul.f32 %v3763_v29, %v3763_v29  ;;  %v2897_v25 = vld [vmem:[%s3943_s7 + $0xd0] sm:$0xff]  }
 0xb02   :  { %2688 = vmatprep.subr.bf16.mxu0 %v2897_v25 }
 0xb03   :  { %1746 = vadd.xlane.f32.xlu1 %v1739_v32  ;;  %v2901_v32 = vld [vmem:[%s3943_s7 + $0xe0] sm:$0xff]  }
 0xb8a   :  { %v1741_v55 = vpop.xlane.xlu0 %1740 }
 0xb8b   :  { %v1748_v56 = vmul.f32 0.0078125, %v1741_v55 }
 0xb8c   :  { %v1743_v58 = vpop.xlane.xlu1 %1742 }
 0xb8d   :  { %v1752_v59 = vadd.f32 1e-06, %v1748_v56  ;;  %v1749_v41 = vmul.f32 0.0078125, %v1743_v58 }
 0xb8e   :  { %v1745_v50 = vpop.xlane.xlu0 %1744 }
 0xb8f   :  { %3021 = vrsqrt.f32 %v1752_v59  ;;  %v1753_v63 = vadd.f32 1e-06, %v1749_v41  ;;  %v1750_v48 = vmul.f32 0.0078125, %v1745_v50 }
 0xb90   :  { %v1747_v2 = vpop.xlane.xlu1 %1746 }
 0xb91   :  { %3023 = vrsqrt.f32 %v1753_v63  ;;  %v1754_v3 = vadd.f32 1e-06, %v1750_v48  ;;  %v1751_v4 = vmul.f32 0.0078125, %v1747_v2 }
 0xb93   :  { %3025 = vrsqrt.f32 %v1754_v3  ;;  %v1755_v35 = vadd.f32 1e-06, %v1751_v4 }
 0xb95   :  { %3027 = vrsqrt.f32 %v1755_v35 }
 0xb99   :  { %v3022_v10 = vpop.eup %3021 }
 0xb9a   :  { %v1760_v57 = vmul.f32 %v3022_v10, %v3750_v14 }
 0xb9b   :  { %v3024_v26 = vpop.eup %3023 }
 0xb9c   :  { %v1768_v13 = vmul.f32 %v1767_v6, %v1760_v57  ;;  %v1761_v15 = vmul.f32 %v3024_v26, %v3753_v60 }
 0xb9d   :  { %v3026_v28 = vpop.eup %3025 }
 0xb9e   :  { %v1769_v40 = vmul.f32 %v1767_v6, %v1761_v15  ;;  %v1776_v8 = vadd.f32 %v1775_v30, %v1768_v13  ;;  %v1762_v18 = vmul.f32 %v3026_v28, %v3758_v20  ;;  %v2898_v20 = vld [vmem:[%s3943_s7 + $0x90] sm:$0xff]  }
 0xb9f   :  { %v3028_v31 = vpop.eup %3027  ;;  %2689 = vmatpush3.bf16.msra.mxu0 %v2898_v20 }
 0xba0   :  { %v1777_v17 = vadd.f32 %v1775_v30, %v1769_v40  ;;  %v1763_v21 = vmul.f32 %v3028_v31, %v3763_v29  ;;  %v1770_v14 = vmul.f32 %v1767_v6, %v1762_v18  ;;  %v2899_v29 = vld [vmem:[%s3943_s7 + $0xd8] sm:$0xff]  }
 0xba1   :  { %2690 = vmatprep.subr.bf16.mxu0 %v2899_v29 }
 0xba2   :  { %v1780_v22 = vpack.c.bf16 %v1777_v17, %v1776_v8  ;;  %v1771_v23 = vmul.f32 %v1767_v6, %v1763_v21  ;;  %v1778_v60 = vadd.f32 %v1775_v30, %v1770_v14 }
 0xba4   :  { %1923 = vmatmul.mubr.bf16.vlgmr.msra.gmra.mrb[48].mxu1 %v1780_v22  ;;  %v1779_v19 = vadd.f32 %v1775_v30, %v1771_v23 }
 0xba5   :  { %1932 = vmatprep.mubr.bf16.mxu1 %v3078_v47  ;;  %v2900_v47 = vld [vmem:[%s3943_s7 + $0x98] sm:$0xff]  }
 0xba6   :  { %v1781_v27 = vpack.c.bf16 %v1779_v19, %v1778_v60  ;;  %2691 = vmatpush3.bf16.msra.mxu0 %v2900_v47 }
 0xba7   :  { %2692 = vmatprep.subr.bf16.mxu0 %v2901_v32 }
 0xbaa   :  { %2693 = vmatpush3.bf16.msra.mxu0 %v2902_v33 }
 0xbab   :  { %2694 = vmatprep.subr.bf16.mxu0 %v2903_v36 }
 0xbac   :  { %1933 = vmatmul.mubr.bf16.gmra.mrb[52].mxu1 %v1781_v27 }
 0xbae   :  { %2695 = vmatpush3.bf16.msra.mxu0 %v2904_v37 }
 0xbaf   :  { %2696 = vmatprep.subr.bf16.mxu0 %v2905_v38 }
 0xbb2   :  { %2697 = vmatpush3.bf16.msra.mxu0 %v2906_v39 }
 0xbb3   :  { %2698 = vmatprep.subr.bf16.mxu0 %v2907_v42 }
 0xbb6   :  { %2699 = vmatpush3.bf16.msra.mxu0 %v2908_v44 }
 0xc77   :  { %v1924_v49 = vpop.f32.mrb[48].mxu1 }
 0xc78   :  { %v1925_v54 = vadd.f32 %v1924_v49, %v1803_v11  ;;  %v1926_v46 = vpop.f32.mrb[49].mxu1 }
 0xc79   :  { %v1927_v16 = vadd.f32 %v1926_v46, %v1807_v9  ;;  %v1928_v34 = vpop.f32.mrb[50].mxu1 }
 0xc7a   :  { %v1951_v53 = vmul.f32 0.70710677, %v1925_v54  ;;  %v1929_v55 = vadd.f32 %v1928_v34, %v1803_v11  ;;  %v1930_v56 = vpop.f32.mrb[51].mxu1  ;;  %v1943_v17 = vmul.f32 0.5, %v1925_v54 }
 0xc7b   :  { %v1952_v58 = vmul.f32 0.70710677, %v1927_v16  ;;  %v1931_v59 = vadd.f32 %v1930_v56, %v1807_v9  ;;  %v1944_v22 = vmul.f32 0.5, %v1927_v16 }
 0xc7c   :  { %3029 = verf.f32 %v1951_v53  ;;  %v1953_v41 = vmul.f32 0.70710677, %v1929_v55  ;;  %v1945_v18 = vmul.f32 0.5, %v1929_v55 }
 0xc7d   :  { %3031 = verf.f32 %v1952_v58  ;;  %v1954_v50 = vmul.f32 0.70710677, %v1931_v59  ;;  %v1946_v23 = vmul.f32 0.5, %v1931_v59 }
 0xc7e   :  { %3033 = verf.f32 %v1953_v41  ;;  %v2172_v41 = vrot.slane %v3611_v45, %v1368_v61 }
 0xc7f   :  { %3035 = verf.f32 %v1954_v50  ;;  %v1934_v63 = vpop.f32.mrb[52].mxu1 }
 0xc80   :  { %v1935_v52 = vadd.f32 %v1934_v63, %v1803_v11  ;;  %v1936_v48 = vpop.f32.mrb[53].mxu1 }
 0xc81   :  { %v1937_v2 = vadd.f32 %v1936_v48, %v1807_v9  ;;  %v1938_v3 = vpop.f32.mrb[54].mxu1 }
 0xc82   :  { %v1955_v4 = vmul.f32 0.70710677, %v1935_v52  ;;  %v1939_v35 = vadd.f32 %v1938_v3, %v1803_v11  ;;  %v1940_v6 = vpop.f32.mrb[55].mxu1  ;;  %v1947_v39 = vmul.f32 0.5, %v1935_v52 }
 0xc83   :  { %v1956_v10 = vmul.f32 0.70710677, %v1937_v2  ;;  %v1941_v57 = vadd.f32 %v1940_v6, %v1807_v9  ;;  %v1948_v1 = vmul.f32 0.5, %v1937_v2 }
 0xc84   :  { %3037 = verf.f32 %v1955_v4  ;;  %v1957_v26 = vmul.f32 0.70710677, %v1939_v35  ;;  %v1949_v42 = vmul.f32 0.5, %v1939_v35 }
 0xc85   :  { %3039 = verf.f32 %v1956_v10  ;;  %v1958_v13 = vmul.f32 0.70710677, %v1941_v57  ;;  %v1950_v11 = vmul.f32 0.5, %v1941_v57 }
 0xc86   :  { %v3030_v15 = vpop.eup %3029  ;;  %3041 = verf.f32 %v1957_v26 }
 0xc87   :  { %v3032_v30 = vpop.eup %3031  ;;  %v1967_v28 = vadd.f32 1.0, %v3030_v15  ;;  %3043 = verf.f32 %v1958_v13 }
 0xc88   :  { %v3034_v40 = vpop.eup %3033  ;;  %v1968_v31 = vadd.f32 1.0, %v3032_v30 }
 0xc89   :  { %v3036_v8 = vpop.eup %3035  ;;  %v1969_v21 = vadd.f32 1.0, %v3034_v40  ;;  %v1975_v19 = vmul.f32 %v1967_v28, %v1943_v17 }
 0xc8a   :  { %v1970_v14 = vadd.f32 1.0, %v3036_v8  ;;  %v1976_v27 = vmul.f32 %v1968_v31, %v1944_v22 }
 0xc8b   :  { %v1977_v60 = vmul.f32 %v1969_v21, %v1945_v18 }
 0xc8c   :  { %v1978_v25 = vmul.f32 %v1970_v14, %v1946_v23 }
 0xc8d   :  { %v1983_v20 = vpack.c.bf16 %v1977_v60, %v1975_v19  ;;  %v2909_v19 = vld [vmem:[%s3945_s9] sm:$0xff]   ;;  %v3079_v60 = vmov 0.0  }
 0xc8e   :  { %v3038_v29 = vpop.eup %3037  ;;  %v1984_v47 = vpack.c.bf16 %v1978_v25, %v1976_v27  ;;  %2741 = vmatprep.subr.bf16.mxu1 %v3079_v60  ;;  %v2910_v27 = vld [vmem:[%s3945_s9 + $0x8] sm:$0xff]   ;;  %v2911_v25 = vld [vmem:[%s3945_s9 + $0x10] sm:$0xff]   ;;  %2757 = vmatprep.mubr.msk.bf16.mxu1 %vm3080_vm2, %v3079_v60 }
 0xc8f   :  { %v3040_v32 = vpop.eup %3039  ;;  %v1971_v33 = vadd.f32 1.0, %v3038_v29  ;;  %2742 = vmatpush3.bf16.msra.mxu1 %v2909_v19  ;;  %v2913_v29 = vld [vmem:[%s3945_s9 + $0x20] sm:$0xff]  }
 0xc90   :  { %v3042_v36 = vpop.eup %3041  ;;  %v1972_v37 = vadd.f32 1.0, %v3040_v32  ;;  %2148 = vmatprep.mubr.bf16.mxu0 %v1984_v47  ;;  %2743 = vmatprep.subr.bf16.mxu1 %v3079_v60  ;;  %v2914_v47 = vld [vmem:[%s3945_s9 + $0x28] sm:$0xff]   ;;  %v2915_v32 = vld [vmem:[%s3945_s9 + $0x30] sm:$0xff]  }
 0xc91   :  { %v3044_v38 = vpop.eup %3043  ;;  %v1973_v44 = vadd.f32 1.0, %v3042_v36  ;;  %2149 = vmatmul.mubr.bf16.vlgmr.msra.gmra.mrb[28].mxu0 %v1983_v20  ;;  %v1979_v49 = vmul.f32 %v1971_v33, %v1947_v39  ;;  %v2912_v20 = vld [vmem:[%s3945_s9 + $0x18] sm:$0xff]  }
 0xc92   :  { %v1974_v9 = vadd.f32 1.0, %v3044_v38  ;;  %v1980_v46 = vmul.f32 %v1972_v37, %v1948_v1  ;;  %v2916_v33 = vld [vmem:[%s3945_s9 + $0x38] sm:$0xff]  }
 0xc93   :  { %v1981_v54 = vmul.f32 %v1973_v44, %v1949_v42  ;;  %2744 = vmatpush3.bf16.msra.mxu1 %v2910_v27 }
 0xc94   :  { %v1982_v16 = vmul.f32 %v1974_v9, %v1950_v11  ;;  %2745 = vmatprep.subr.bf16.mxu1 %v3079_v60 }
 0xc95   :  { %v1985_v34 = vpack.c.bf16 %v1981_v54, %v1979_v49 }
 0xc96   :  { %v1986_v53 = vpack.c.bf16 %v1982_v16, %v1980_v46  ;;  %v3053_v16 = vld [vmem:[%s3944_s8] sm:$0xf]  ;;  %s3081_s8 = smov [#allocation2]  }
 0xc97   :  { %2746 = vmatpush3.bf16.msra.mxu1 %v2911_v25  ;;  %s2379_s9 = sshll.u32 %s3081_s8, 4  ;;  %s2380_s9 = int_to_ptr.vmem [resolvable:$true] %s2379_s9 }
 0xc98   :  { %2156 = vmatprep.mubr.bf16.mxu0 %v1986_v53  ;;  %2747 = vmatprep.subr.bf16.mxu1 %v3079_v60  ;;  %s3054_s28 = scalar_lea.vmem %s2380_s9, 32  ;;  %p3059_p1 = scmp.lt.s32.totalorder %s2380_s9, %s2380_s9 }
 0xc99   :  { %2157 = vmatmul.mubr.bf16.gmra.mrb[32].mxu0 %v1985_v34  ;;  %v2224_v34 = vrot.slane %v3053_v16, %v3320_v0  ;;  %p3055_p0 = scmp.ne.s32.totalorder %s2380_s9, %s3054_s28  ;;  %p3060_p2 = scmp.lt.s32.totalorder %s3054_s28, %s3054_s28 }
 0xc9b   :  { %2748 = vmatpush3.bf16.msra.mxu1 %v2912_v20  ;;  %p3061_p3 = por %p3060_p2, %p3059_p1 }
 0xc9c   :  { %2749 = vmatprep.subr.bf16.mxu1 %v3079_v60 }
 0xc9d   :  { %p3062_p4 = pnand %p3061_p3, %p3055_p0 }
 0xc9f   :  { %2750 = vmatpush3.bf16.msra.mxu1 %v2913_v29 }
 0xca0   :  { %2751 = vmatprep.subr.bf16.mxu1 %v3079_v60 }
 0xca3   :  { %2752 = vmatpush3.bf16.msra.mxu1 %v2914_v47 }
 0xca4   :  { %2753 = vmatprep.subr.bf16.mxu1 %v3079_v60 }
 0xca7   :  { %2754 = vmatpush3.bf16.msra.mxu1 %v2915_v32 }
 0xca8   :  { %2755 = vmatprep.subr.bf16.mxu1 %v3079_v60 }
 0xcab   :  { %2756 = vmatpush3.bf16.msra.mxu1 %v2916_v33 }
 0xd64   :  { %v2700_v55 = vpop.f32.mrb[28].mxu0 }
 0xd65   :  { %v2701_v56 = vpop.f32.mrb[29].mxu0 }
 0xd66   :  { %v2702_v58 = vadd.f32 %v2701_v56, %v2700_v55  ;;  %v2703_v59 = vpop.f32.mrb[30].mxu0 }
 0xd67   :  { %v2704_v50 = vpop.f32.mrb[31].mxu0 }
 0xd68   :  { %v2165_v63 = vadd.f32 %v2702_v58, %v3722_v43  ;;  %v2705_v52 = vadd.f32 %v2704_v50, %v2703_v59  ;;  %v2232_v58 = vrot.slane %v3053_v16, %v3527_v5 }
 0xd6a   :  { %v2166_v48 = vadd.f32 %v2705_v52, %v3725_v12  ;;  %v2173_v2 = vadd.f32 %v2172_v41, %v2165_v63 }
 0xd6c   :  { %2177 = vadd.xlane.f32.xlu0 %v2173_v2  ;;  %v2706_v3 = vpop.f32.mrb[32].mxu0  ;;  %v2174_v4 = vadd.f32 %v2172_v41, %v2166_v48 }
 0xd6d   :  { %v2707_v35 = vpop.f32.mrb[33].mxu0 }
 0xd6e   :  { %v2708_v6 = vadd.f32 %v2707_v35, %v2706_v3  ;;  %2179 = vadd.xlane.f32.xlu1 %v2174_v4  ;;  %v2709_v10 = vpop.f32.mrb[34].mxu0 }
 0xd6f   :  { %v2710_v57 = vpop.f32.mrb[35].mxu0 }
 0xd70   :  { %v2167_v26 = vadd.f32 %v2708_v6, %v3729_v24  ;;  %v2711_v51 = vadd.f32 %v2710_v57, %v2709_v10 }
 0xd72   :  { %v2168_v61 = vadd.f32 %v2711_v51, %v3733_v62  ;;  %v2175_v45 = vadd.f32 %v2172_v41, %v2167_v26 }
 0xd74   :  { %2181 = vadd.xlane.f32.xlu0 %v2175_v45  ;;  %v2176_v43 = vadd.f32 %v2172_v41, %v2168_v61 }
 0xd76   :  { %2183 = vadd.xlane.f32.xlu1 %v2176_v43 }
 0xdf9   :  { %v2178_v13 = vpop.xlane.xlu0 %2177 }
 0xdfa   :  { %v2185_v12 = vmul.f32 0.0078125, %v2178_v13 }
 0xdfb   :  { %v2180_v15 = vpop.xlane.xlu1 %2179 }
 0xdfc   :  { %v3874_v30 = vsub.f32 %v2173_v2, %v2185_v12  ;;  %v2186_v28 = vmul.f32 0.0078125, %v2180_v15 }
 0xdfe   :  { %v3876_v40 = vsub.f32 %v2174_v4, %v2186_v28  ;;  %v2193_v31 = vmul.f32 %v3874_v30, %v3874_v30 }
 0xe00   :  { %2197 = vadd.xlane.f32.xlu0 %v2193_v31  ;;  %v2194_v24 = vmul.f32 %v3876_v40, %v3876_v40 }
 0xe01   :  { %v2182_v62 = vpop.xlane.xlu0 %2181 }
 0xe02   :  { %v2187_v8 = vmul.f32 0.0078125, %v2182_v62  ;;  %2199 = vadd.xlane.f32.xlu1 %v2194_v24 }
 0xe03   :  { %v2184_v17 = vpop.xlane.xlu1 %2183 }
 0xe04   :  { %v3882_v18 = vsub.f32 %v2175_v45, %v2187_v8  ;;  %v2188_v21 = vmul.f32 0.0078125, %v2184_v17 }
 0xe06   :  { %v3884_v22 = vsub.f32 %v2176_v43, %v2188_v21  ;;  %v2195_v23 = vmul.f32 %v3882_v18, %v3882_v18 }
 0xe08   :  { %2201 = vadd.xlane.f32.xlu0 %v2195_v23  ;;  %v2196_v14 = vmul.f32 %v3884_v22, %v3884_v22 }
 0xe0a   :  { %2203 = vadd.xlane.f32.xlu1 %v2196_v14  ;;  %v2275_v14 = vrot.slane %v3053_v16, %v3532_v7 }
 0xe8d   :  { %v2198_v36 = vpop.xlane.xlu0 %2197 }
 0xe8e   :  { %v2205_v37 = vmul.f32 0.0078125, %v2198_v36 }
 0xe8f   :  { %v2200_v38 = vpop.xlane.xlu1 %2199 }
 0xe90   :  { %v2209_v39 = vadd.f32 1e-06, %v2205_v37  ;;  %v2206_v42 = vmul.f32 0.0078125, %v2200_v38 }
 0xe92   :  { %3045 = vrsqrt.f32 %v2209_v39  ;;  %v2210_v44 = vadd.f32 1e-06, %v2206_v42 }
 0xe94   :  { %3047 = vrsqrt.f32 %v2210_v44 }
 0xe95   :  { %v2202_v1 = vpop.xlane.xlu0 %2201 }
 0xe96   :  { %v2207_v11 = vmul.f32 0.0078125, %v2202_v1 }
 0xe97   :  { %v2204_v9 = vpop.xlane.xlu1 %2203 }
 0xe98   :  { %v2211_v49 = vadd.f32 1e-06, %v2207_v11  ;;  %v2208_v54 = vmul.f32 0.0078125, %v2204_v9 }
 0xe9a   :  { %3049 = vrsqrt.f32 %v2211_v49  ;;  %v2212_v46 = vadd.f32 1e-06, %v2208_v54 }
 0xe9c   :  { %v3046_v53 = vpop.eup %3045  ;;  %3051 = vrsqrt.f32 %v2212_v46 }
 0xe9d   :  { %v2217_v55 = vmul.f32 %v3046_v53, %v3874_v30 }
 0xe9e   :  { %v3048_v56 = vpop.eup %3047 }
 0xe9f   :  { %v2225_v59 = vmul.f32 %v2224_v34, %v2217_v55  ;;  %v2218_v41 = vmul.f32 %v3048_v56, %v3876_v40 }
 0xea1   :  { %v2226_v50 = vmul.f32 %v2224_v34, %v2218_v41  ;;  %v2233_v63 = vadd.f32 %v2232_v58, %v2225_v59 }
 0xea3   :  { %v2234_v52 = vadd.f32 %v2232_v58, %v2226_v50 }
 0xea4   :  { %v3050_v48 = vpop.eup %3049 }
 0xea5   :  { %v2237_v2 = vadd.f32 %v2234_v52, %v2233_v63  ;;  %v2219_v3 = vmul.f32 %v3050_v48, %v3882_v18 }
 0xea6   :  { %v3052_v4 = vpop.eup %3051 }
 0xea7   :  { %v2238_v35 = vrot.slane %v2237_v2, 4  ;;  %v2227_v0 = vmul.f32 %v2224_v34, %v2219_v3  ;;  %v2220_v6 = vmul.f32 %v3052_v4, %v3884_v22 }
 0xea9   :  { %v2239_v10 = vadd.f32 %v2238_v35, %v2237_v2  ;;  %v2228_v57 = vmul.f32 %v2224_v34, %v2220_v6  ;;  %v2235_v26 = vadd.f32 %v2232_v58, %v2227_v0 }
 0xeab   :  { %v2236_v51 = vadd.f32 %v2232_v58, %v2228_v57  ;;  %v2240_v5 = vrot.slane %v2239_v10, 2 }
 0xead   :  { %v2244_v61 = vadd.f32 %v2236_v51, %v2235_v26  ;;  %v2241_v45 = vadd.f32 %v2240_v5, %v2239_v10 }
 0xeaf   :  { %v2245_v43 = vrot.slane %v2244_v61, 4  ;;  %v2242_v13 = vrot.slane %v2241_v45, 1 }
 0xeb1   :  { %v2246_v12 = vadd.f32 %v2245_v43, %v2244_v61  ;;  %v2243_v30 = vadd.f32 %v2242_v13, %v2241_v45 }
 0xeb3   :  { %v2247_v15 = vrot.slane %v2246_v12, 2  ;;  %v2252_v31 = vmul.f32 0.0625, %v2243_v30 }
 0xeb5   :  { %v2248_v28 = vadd.f32 %v2247_v15, %v2246_v12  ;;  %v2254_v8 = vpack.c.bf16 %v2252_v31, %v2252_v31 }
 0xeb7   :  { %v2249_v40 = vrot.slane %v2248_v28, 1  ;;  %v2278_v18 = vunpack.c.l.b16 %v2254_v8 }
 0xeb9   :  { %v2250_v24 = vadd.f32 %v2249_v40, %v2248_v28 }
 0xebb   :  { %v2253_v62 = vmul.f32 0.0625, %v2250_v24 }
 0xebd   :  { %v2255_v17 = vpack.c.bf16 %v2253_v62, %v2253_v62 }
 0xebf   :  { %v2279_v21 = vunpack.c.l.b16 %v2255_v17 }
 0xec1   :  { %v2281_v22 = vsel %vm2280_vm3, %v2279_v21, %v2278_v18 }
 0xec2   :  { %v2282_v23 = vpack.c.b16 %v2281_v22, %v2281_v22 }
 0xec4   :  { %2758 = vmatmul.mubr.bf16.vlgmr.msra.gmra.mrb[56].mxu1 %v2282_v23 }
 0xf97   :  { %v2366_v19 = vpop.f32.mrb[56].mxu1 }
 0xf98   :  { %v2367_v60 = vadd.f32 %v2366_v19, %v2275_v14  ;;  %v2759_v27 = vpop.f32.mrb[57].mxu1 }
 0xf99   :  { %v2369_v25 = vpop.f32.mrb[58].mxu1 }
 0xf9a   :  { %2372 = vst [vmem:[#allocation2] sm:$0x3] %v2367_v60  ;;  %v2760_v20 = vpop.f32.mrb[59].mxu1 }
 0xf9b   :  { %3065 = shalt.err (!%p3062_p4)
}
 0xf9c   :  { %s3066_s11 = scalar_lea.hbm %s3946_s10, 32 }
 0xf9d   :  { %p3067_p5 = scmp.ne.s32.totalorder %s3946_s10, %s3066_s11  ;;  %p3070_p6 = scmp.lt.u32.totalorder %s3066_s11, %s3946_s10 }
 0xf9f   :  { %p3072_p7 = pnand %p3070_p6, %p3067_p5 }
 0xfa1   :  { %3075 = shalt.err (!%p3072_p7)
}
 0xfa2   :  { %2382 = dma.vmem_to_hbm [thread:$0]  %s2380_s9, 32, %s3946_s10, [#allocation3]  }
 0xfa3   :  { %3076 = dma.done.wait [#allocation3], 32  }
 0xfa4   :  { %3077 = vsyncadd [#allocation3], 4294967264 }
 0xfa5   :  { %2386 = vsyncpa [#allocation3], 1 }

</bundles_post_ra>
